<compile_context>
chip_gen: v7x
topology: tpu7x:2x2x1
jax: 0.10.0
libtpu: 0.0.40
codegen_flags: <defaults>
</compile_context>

<pallas_src>
import functools
import math

import jax
import jax.numpy as jnp
import numpy as np
from jax.experimental import pallas as pl
from jax.experimental.pallas import tpu as pltpu

_EPS = 1e-5
_INV_SQRT2 = 1.0 / math.sqrt(2.0)


# -----------------------------------------------------------------------------
# Fused kernel: GroupNorm(C,C) -> exact GELU -> one im2col MXU matmul that is
# [all M convs + channel concat + folded 1x1 conv_down].
# One grid step == TB batch elements; L is the lane (minor) axis.
# -----------------------------------------------------------------------------
def _mk_conv1d_block_kernel(x_ref, g_ref, be_ref, w_ref, b_ref, out_ref, *, kmax):
    f32 = jnp.float32
    x = x_ref[...].astype(f32)                       # (TB, Cin, L)
    tb, cin, L = x.shape

    # ---- GroupNorm(num_groups == num_channels): per-(sample, channel) stats
    # over L, single read pass (var = E[x^2] - mu^2); affine folded into one
    # scale/shift FMA pass.
    mu = jnp.mean(x, axis=2, keepdims=True)
    ex2 = jnp.mean(x * x, axis=2, keepdims=True)
    var = ex2 - mu * mu
    scale = g_ref[...].astype(f32) * jax.lax.rsqrt(var + _EPS)   # (TB, Cin, 1)
    shift = be_ref[...].astype(f32) - mu * scale
    h = x * scale + shift

    # ---- exact (erf) GELU, matching torch.nn.GELU() default.
    h = 0.5 * h * (1.0 + jax.lax.erf(h * _INV_SQRT2))

    # ---- im2col for every batch element; columns of all TB elements are
    # concatenated along the lane axis (each slab is lane-tile aligned since
    # L is a multiple of 128).  Zero taps in the packed weight make the single
    # matmul exact for all kernel sizes.
    pad = (kmax - 1) // 2
    z = jnp.zeros((cin, pad), f32) if pad > 0 else None
    cols = []
    for b in range(tb):                               # static unroll
        hb = h[b]                                     # (Cin, L)
        if pad > 0:
            hb = jnp.concatenate([z, hb, z], axis=1)  # (Cin, L + kmax - 1)
        cols.append(jnp.concatenate([hb[:, t:t + L] for t in range(kmax)], axis=0))
    im = jnp.concatenate(cols, axis=1) if tb > 1 else cols[0]    # (Kmax*Cin, TB*L)

    # ---- single MXU matmul: all M convolutions + concat + conv_down, with the
    # weight already stored in the MXU dtype (bf16 by default), f32 accumulate.
    y = jnp.dot(w_ref[...], im.astype(w_ref.dtype),
                preferred_element_type=f32) + b_ref[...].astype(f32)   # (Cout, TB*L)

    # ---- (Cout, TB*L) -> (TB, Cout, L): one lane-tile-aligned store per element.
    for b in range(tb):
        out_ref[b] = y[:, b * L:(b + 1) * L].astype(out_ref.dtype)


# -----------------------------------------------------------------------------
# Tile-size / VMEM-budget helpers (explicit budget so the same code stays safe
# on v7x's 64 MiB VMEM as channel counts / L grow).
# -----------------------------------------------------------------------------
def _vmem_bytes_per_step(tb, cin, cout, L, kmax):
    f32 = 4
    lpad = L + kmax - 1
    io = 2 * tb * cin * L * f32 + 2 * tb * cout * L * f32      # double-buffered x / out
    interm = (tb * cin * L * f32                 # h after GN/GELU
              + tb * cin * lpad * f32            # padded rows
              + kmax * cin * tb * L * (f32 + 2)  # im2col (f32 build + bf16 cast)
              + cout * tb * L * f32)             # matmul result
    weights = 2 * (cout * kmax * cin * 2 + cout * f32 + 2 * cin * f32)
    return int(1.5 * (io + interm + weights))    # 1.5x margin for compiler temps


def _choose_tb(B, cin, cout, L, kmax, budget_bytes):
    tb = 1
    for cand in range(1, B + 1):
        if B % cand:
            continue
        if B >= 2 and B // cand < 2:   # keep >= 2 grid steps (v7x has 2 TensorCores)
            continue
        if _vmem_bytes_per_step(cand, cin, cout, L, kmax) <= budget_bytes:
            tb = cand
    return tb


def multi_kernel_conv1d_block(x, packed, *, tb=None, vmem_budget_bytes=24 << 20):
    """x: (B, Cin, L) f32 -> (B, Cout, L) f32."""
    B, Cin, L = x.shape
    kmax = packed["kmax"]
    Cout = packed["w_eff"].shape[0]
    if tb is None:
        tb = _choose_tb(B, Cin, Cout, L, kmax, vmem_budget_bytes)
    assert B % tb == 0, (B, tb)

    kern = functools.partial(_mk_conv1d_block_kernel, kmax=kmax)
    vmem_limit = int(min(max(2 * _vmem_bytes_per_step(tb, Cin, Cout, L, kmax),
                             32 << 20), 48 << 20))

    return pl.pallas_call(
        kern,
        out_shape=jax.ShapeDtypeStruct((B, Cout, L), jnp.float32),
        grid=(B // tb,),
        in_specs=[
            pl.BlockSpec((tb, Cin, L), lambda g: (g, 0, 0)),       # x (TB per step)
            pl.BlockSpec((Cin, 1), lambda g: (0, 0)),              # GN gamma
            pl.BlockSpec((Cin, 1), lambda g: (0, 0)),              # GN beta
            pl.BlockSpec((Cout, kmax * Cin), lambda g: (0, 0)),    # folded conv W (MXU dtype)
            pl.BlockSpec((Cout, 1), lambda g: (0, 0)),             # folded conv bias
        ],
        out_specs=pl.BlockSpec((tb, Cout, L), lambda g: (g, 0, 0)),
        compiler_params=pltpu.CompilerParams(
            dimension_semantics=("parallel",),        # batch tiles sharded over TCs
            vmem_limit_bytes=vmem_limit),
    )(x, packed["gamma"], packed["beta"], packed["w_eff"], packed["b_eff"])


# -----------------------------------------------------------------------------
# Parameter construction (mirrors __init__ + _init_weights) and lane-dense
# repacking with conv_down folded in.
# -----------------------------------------------------------------------------
def init_params(key, in_channel, out_channel, kernel_sizes, transpose=False):
    transpose = bool(transpose or in_channel > out_channel)
    M = len(kernel_sizes)
    keys = jax.random.split(key, 2 * M + 1)
    convs = []
    for m, k in enumerate(kernel_sizes):
        std = math.sqrt(2.0 / (k * out_channel))     # Conv1d: normal(0, sqrt(2/(k*out)))
        if transpose:
            w = std * jax.random.normal(keys[m], (in_channel, out_channel, k), jnp.float32)
            # _init_weights does not touch ConvTranspose1d -> bias stays nonzero;
            # use small deterministic values so the bias path is exercised.
            b = 0.05 * jax.random.normal(keys[M + m], (out_channel,), jnp.float32)
        else:
            w = std * jax.random.normal(keys[m], (out_channel, in_channel, k), jnp.float32)
            b = jnp.zeros((out_channel,), jnp.float32)   # _init_weights: Conv1d bias = 0
        convs.append((w, b))
    std_d = math.sqrt(2.0 / out_channel)                 # conv_down: kernel_size = 1
    wd = std_d * jax.random.normal(keys[2 * M], (out_channel, M * out_channel, 1), jnp.float32)
    return dict(kernel_sizes=tuple(int(k) for k in kernel_sizes),
                transpose=transpose,
                in_channel=in_channel, out_channel=out_channel,
                gamma=jnp.ones((in_channel,), jnp.float32),     # GroupNorm weight = 1
                beta=jnp.zeros((in_channel,), jnp.float32),     # GroupNorm bias = 0
                convs=convs,
                wd=wd, bd=jnp.zeros((out_channel,), jnp.float32))


def pack_params(params, *, matmul_dtype=jnp.bfloat16):
    """Pack all conv weights (+ folded conv_down) into one (Cout, Kmax*Cin) matrix."""
    ks = params["kernel_sizes"]
    assert all(k % 2 == 1 for k in ks), \
        "even kernel sizes change the length (torch.cat would fail too)"
    cin, cout = params["in_channel"], params["out_channel"]
    M, kmax = len(ks), max(ks)
    maxpad = (kmax - 1) // 2
    wcat = np.zeros((M * cout, kmax * cin), np.float32)
    bcat = np.zeros((M * cout,), np.float32)
    for m, (k, (w, b)) in enumerate(zip(ks, params["convs"])):
        w = np.asarray(w)
        if params["transpose"]:
            # stride-1 ConvTranspose1d == Conv1d with axes-swapped, tap-flipped weight.
            w = np.flip(np.transpose(w, (1, 0, 2)), axis=2)
        off = maxpad - (k - 1) // 2
        for j in range(k):
            t = off + j
            wcat[m * cout:(m + 1) * cout, t * cin:(t + 1) * cin] = w[:, :, j]
        bcat[m * cout:(m + 1) * cout] = np.asarray(b)
    if M > 1:
        # Fold the 1x1 conv_down: no nonlinearity between concat and conv_down,
        # so W_eff = Wdown @ Wcat, b_eff = Wdown @ bcat + bdown (exact up to fp).
        wd2 = np.asarray(params["wd"])[:, :, 0]          # (Cout, M*Cout)
        w_eff = wd2 @ wcat                               # (Cout, Kmax*Cin)
        b_eff = wd2 @ bcat + np.asarray(params["bd"])    # (Cout,)
    else:
        w_eff, b_eff = wcat, bcat
    return dict(kmax=kmax,
                gamma=jnp.asarray(params["gamma"]).reshape(cin, 1),
                beta=jnp.asarray(params["beta"]).reshape(cin, 1),
                w_eff=jnp.asarray(w_eff, dtype=matmul_dtype),     # pre-cast to MXU dtype
                b_eff=jnp.asarray(b_eff.reshape(cout, 1), dtype=jnp.float32))


# -----------------------------------------------------------------------------
# Pure-JAX reference (mirror of MultiKernelConv1DBlock.forward) for validation.
# -----------------------------------------------------------------------------
def reference_forward(x, params):
    g = params["gamma"][None, :, None]
    b = params["beta"][None, :, None]
    mu = jnp.mean(x, axis=2, keepdims=True)
    var = jnp.mean((x - mu) ** 2, axis=2, keepdims=True)
    h = (x - mu) * jax.lax.rsqrt(var + _EPS) * g + b
    h = 0.5 * h * (1.0 + jax.lax.erf(h * _INV_SQRT2))
    hi = jax.lax.Precision.HIGHEST
    outs = []
    for k, (w, bias) in zip(params["kernel_sizes"], params["convs"]):
        pad = (k - 1) // 2
        if params["transpose"]:
            w = jnp.flip(jnp.transpose(w, (1, 0, 2)), axis=2)
        y = jax.lax.conv_general_dilated(h, w, window_strides=(1,),
                                         padding=[(pad, pad)],
                                         dimension_numbers=("NCH", "OIH", "NCH"),
                                         precision=hi)
        outs.append(y + bias[None, :, None])
    y = jnp.concatenate(outs, axis=1)
    if len(params["kernel_sizes"]) > 1:
        y = jax.lax.conv_general_dilated(y, params["wd"], window_strides=(1,),
                                         padding=[(0, 0)],
                                         dimension_numbers=("NCH", "OIH", "NCH"),
                                         precision=hi)
        y = y + params["bd"][None, :, None]
    return y


# -----------------------------------------------------------------------------
if __name__ == "__main__":
    key = jax.random.PRNGKey(0)
    k1, k2, k3, k4 = jax.random.split(key, 4)

    # --- Config A: multi-kernel + conv_down (Conv1d path). B=8 so the batched
    # grid runs 2 "parallel" steps of TB=4 (keeps both v7x TCs busy).
    B, Cin, Cout, L = 8, 4, 8, 128
    kernel_sizes = (3, 7, 15)
    x = jax.random.normal(k1, (B, Cin, L), dtype=jnp.float32)
    params = init_params(k2, Cin, Cout, kernel_sizes)
    ref = reference_forward(x, params)

    # f32-MXU pass: check against the pure-JAX reference.
    out_f32 = jax.block_until_ready(
        multi_kernel_conv1d_block(x, pack_params(params, matmul_dtype=jnp.float32)))
    np.testing.assert_allclose(np.asarray(out_f32), np.asarray(ref),
                               rtol=1e-2, atol=1e-2)

    # Default bf16-MXU pass (f32 accumulation) — the performance configuration.
    out = jax.block_until_ready(multi_kernel_conv1d_block(x, pack_params(params)))
    assert out.shape == (B, Cout, L), out.shape
    assert bool(jnp.isfinite(out).all())
    assert float(jnp.max(jnp.abs(out - ref))) < 0.2, float(jnp.max(jnp.abs(out - ref)))

    # --- Config B: single kernel size (no conv_down), in>out -> ConvTranspose1d path.
    B2, Cin2, Cout2, L2 = 4, 8, 4, 256
    x2 = jax.random.normal(k3, (B2, Cin2, L2), dtype=jnp.float32)
    params2 = init_params(k4, Cin2, Cout2, (5,))
    ref2 = reference_forward(x2, params2)
    out2 = jax.block_until_ready(multi_kernel_conv1d_block(x2, pack_params(params2)))
    assert out2.shape == (B2, Cout2, L2), out2.shape
    assert bool(jnp.isfinite(out2).all())
    assert float(jnp.max(jnp.abs(out2 - ref2))) < 0.2, float(jnp.max(jnp.abs(out2 - ref2)))

    print("KERNEL_OK")
</pallas_src>

<mosaic_0001>
module attributes {stable_mosaic.version = 11 : i64} {
  func.func @_mk_conv1d_block_kernel(%arg0: i32, %arg1: memref<4x4x128xf32, #tpu.memory_space<vmem>>, %arg2: memref<4x1xf32, #tpu.memory_space<vmem>>, %arg3: memref<4x1xf32, #tpu.memory_space<vmem>>, %arg4: memref<8x60xf32, #tpu.memory_space<vmem>>, %arg5: memref<8x1xf32, #tpu.memory_space<vmem>>, %arg6: memref<4x8x128xf32, #tpu.memory_space<vmem>>) attributes {dimension_semantics = [#tpu.dimension_semantics<parallel>], iteration_bounds = array<i64: 2>, scalar_prefetch = 0 : i64, scratch_operands = 0 : i64, tpu.core_type = #tpu.core_type<tc>, window_params = [{transform_indices = @transform_0, window_bounds = array<i64: 4, 4, 128>}, {pipeline_mode = #tpu.pipeline_mode<synchronous>, transform_indices = @transform_1, window_bounds = array<i64: 4, 1>}, {pipeline_mode = #tpu.pipeline_mode<synchronous>, transform_indices = @transform_2, window_bounds = array<i64: 4, 1>}, {pipeline_mode = #tpu.pipeline_mode<synchronous>, transform_indices = @transform_3, window_bounds = array<i64: 8, 60>}, {pipeline_mode = #tpu.pipeline_mode<synchronous>, transform_indices = @transform_4, window_bounds = array<i64: 8, 1>}, {transform_indices = @transform_5, window_bounds = array<i64: 4, 8, 128>}]} {
    %c0 = arith.constant 0 : index
    %c0_0 = arith.constant 0 : index
    %c0_1 = arith.constant 0 : index
    %0 = vector.load %arg1[%c0, %c0_0, %c0_1] : memref<4x4x128xf32, #tpu.memory_space<vmem>>, vector<4x4x128xf32>
    %cst = arith.constant dense<0.000000e+00> : vector<4x4xf32>
    %1 = vector.multi_reduction <add>, %0, %cst [2] : vector<4x4x128xf32> to vector<4x4xf32>
    %2 = vector.shape_cast %1 : vector<4x4xf32> to vector<4x4x1xf32>
    %cst_2 = arith.constant 1.280000e+02 : f32
    %3 = vector.broadcast %cst_2 : f32 to vector<4x4x1xf32>
    %4 = arith.divf %2, %3 : vector<4x4x1xf32>
    %5 = arith.mulf %0, %0 : vector<4x4x128xf32>
    %cst_3 = arith.constant dense<0.000000e+00> : vector<4x4xf32>
    %6 = vector.multi_reduction <add>, %5, %cst_3 [2] : vector<4x4x128xf32> to vector<4x4xf32>
    %7 = vector.shape_cast %6 : vector<4x4xf32> to vector<4x4x1xf32>
    %cst_4 = arith.constant 1.280000e+02 : f32
    %8 = vector.broadcast %cst_4 : f32 to vector<4x4x1xf32>
    %9 = arith.divf %7, %8 : vector<4x4x1xf32>
    %10 = arith.mulf %4, %4 : vector<4x4x1xf32>
    %11 = arith.subf %9, %10 : vector<4x4x1xf32>
    %c0_5 = arith.constant 0 : index
    %c0_6 = arith.constant 0 : index
    %12 = vector.load %arg2[%c0_5, %c0_6] : memref<4x1xf32, #tpu.memory_space<vmem>>, vector<4x1xf32>
    %cst_7 = arith.constant 9.99999974E-6 : f32
    %13 = vector.broadcast %cst_7 : f32 to vector<4x4x1xf32>
    %14 = arith.addf %11, %13 : vector<4x4x1xf32>
    %15 = math.rsqrt %14 : vector<4x4x1xf32>
    %16 = vector.shape_cast %12 : vector<4x1xf32> to vector<1x4x1xf32>
    %17 = vector.broadcast %16 : vector<1x4x1xf32> to vector<4x4x1xf32>
    %18 = arith.mulf %17, %15 : vector<4x4x1xf32>
    %c0_8 = arith.constant 0 : index
    %c0_9 = arith.constant 0 : index
    %19 = vector.load %arg3[%c0_8, %c0_9] : memref<4x1xf32, #tpu.memory_space<vmem>>, vector<4x1xf32>
    %20 = arith.mulf %4, %18 : vector<4x4x1xf32>
    %21 = vector.shape_cast %19 : vector<4x1xf32> to vector<1x4x1xf32>
    %22 = vector.broadcast %21 : vector<1x4x1xf32> to vector<4x4x1xf32>
    %23 = arith.subf %22, %20 : vector<4x4x1xf32>
    %24 = vector.broadcast %18 : vector<4x4x1xf32> to vector<4x4x128xf32>
    %25 = arith.mulf %0, %24 : vector<4x4x128xf32>
    %26 = vector.broadcast %23 : vector<4x4x1xf32> to vector<4x4x128xf32>
    %27 = arith.addf %25, %26 : vector<4x4x128xf32>
    %cst_10 = arith.constant 5.000000e-01 : f32
    %28 = vector.broadcast %cst_10 : f32 to vector<4x4x128xf32>
    %29 = arith.mulf %28, %27 : vector<4x4x128xf32>
    %cst_11 = arith.constant 0.707106769 : f32
    %30 = vector.broadcast %cst_11 : f32 to vector<4x4x128xf32>
    %31 = arith.mulf %27, %30 : vector<4x4x128xf32>
    %32 = math.erf %31 : vector<4x4x128xf32>
    %cst_12 = arith.constant 1.000000e+00 : f32
    %33 = vector.broadcast %cst_12 : f32 to vector<4x4x128xf32>
    %34 = arith.addf %33, %32 : vector<4x4x128xf32>
    %35 = arith.mulf %29, %34 : vector<4x4x128xf32>
    %cst_13 = arith.constant 0.000000e+00 : f32
    %36 = vector.broadcast %cst_13 : f32 to vector<4x7xf32>
    %37 = vector.extract_strided_slice %35 {offsets = [0, 0, 0], sizes = [1, 4, 128], strides = [1, 1, 1]} : vector<4x4x128xf32> to vector<1x4x128xf32>
    %38 = vector.shape_cast %37 : vector<1x4x128xf32> to vector<4x128xf32>
    %39 = tpu.concatenate %36, %38, %36 in 1 : vector<4x7xf32>, vector<4x128xf32>, vector<4x7xf32> -> vector<4x142xf32>
    %40 = vector.extract_strided_slice %39 {offsets = [0, 0], sizes = [4, 128], strides = [1, 1]} : vector<4x142xf32> to vector<4x128xf32>
    %41 = vector.extract_strided_slice %39 {offsets = [0, 1], sizes = [4, 128], strides = [1, 1]} : vector<4x142xf32> to vector<4x128xf32>
    %42 = vector.extract_strided_slice %39 {offsets = [0, 2], sizes = [4, 128], strides = [1, 1]} : vector<4x142xf32> to vector<4x128xf32>
    %43 = vector.extract_strided_slice %39 {offsets = [0, 3], sizes = [4, 128], strides = [1, 1]} : vector<4x142xf32> to vector<4x128xf32>
    %44 = vector.extract_strided_slice %39 {offsets = [0, 4], sizes = [4, 128], strides = [1, 1]} : vector<4x142xf32> to vector<4x128xf32>
    %45 = vector.extract_strided_slice %39 {offsets = [0, 5], sizes = [4, 128], strides = [1, 1]} : vector<4x142xf32> to vector<4x128xf32>
    %46 = vector.extract_strided_slice %39 {offsets = [0, 6], sizes = [4, 128], strides = [1, 1]} : vector<4x142xf32> to vector<4x128xf32>
    %47 = vector.extract_strided_slice %39 {offsets = [0, 7], sizes = [4, 128], strides = [1, 1]} : vector<4x142xf32> to vector<4x128xf32>
    %48 = vector.extract_strided_slice %39 {offsets = [0, 8], sizes = [4, 128], strides = [1, 1]} : vector<4x142xf32> to vector<4x128xf32>
    %49 = vector.extract_strided_slice %39 {offsets = [0, 9], sizes = [4, 128], strides = [1, 1]} : vector<4x142xf32> to vector<4x128xf32>
    %50 = vector.extract_strided_slice %39 {offsets = [0, 10], sizes = [4, 128], strides = [1, 1]} : vector<4x142xf32> to vector<4x128xf32>
    %51 = vector.extract_strided_slice %39 {offsets = [0, 11], sizes = [4, 128], strides = [1, 1]} : vector<4x142xf32> to vector<4x128xf32>
    %52 = vector.extract_strided_slice %39 {offsets = [0, 12], sizes = [4, 128], strides = [1, 1]} : vector<4x142xf32> to vector<4x128xf32>
    %53 = vector.extract_strided_slice %39 {offsets = [0, 13], sizes = [4, 128], strides = [1, 1]} : vector<4x142xf32> to vector<4x128xf32>
    %54 = vector.extract_strided_slice %39 {offsets = [0, 14], sizes = [4, 128], strides = [1, 1]} : vector<4x142xf32> to vector<4x128xf32>
    %55 = tpu.concatenate %40, %41, %42, %43, %44, %45, %46, %47, %48, %49, %50, %51, %52, %53, %54 in 0 : vector<4x128xf32>, vector<4x128xf32>, vector<4x128xf32>, vector<4x128xf32>, vector<4x128xf32>, vector<4x128xf32>, vector<4x128xf32>, vector<4x128xf32>, vector<4x128xf32>, vector<4x128xf32>, vector<4x128xf32>, vector<4x128xf32>, vector<4x128xf32>, vector<4x128xf32>, vector<4x128xf32> -> vector<60x128xf32>
    %56 = vector.extract_strided_slice %35 {offsets = [1, 0, 0], sizes = [1, 4, 128], strides = [1, 1, 1]} : vector<4x4x128xf32> to vector<1x4x128xf32>
    %57 = vector.shape_cast %56 : vector<1x4x128xf32> to vector<4x128xf32>
    %58 = tpu.concatenate %36, %57, %36 in 1 : vector<4x7xf32>, vector<4x128xf32>, vector<4x7xf32> -> vector<4x142xf32>
    %59 = vector.extract_strided_slice %58 {offsets = [0, 0], sizes = [4, 128], strides = [1, 1]} : vector<4x142xf32> to vector<4x128xf32>
    %60 = vector.extract_strided_slice %58 {offsets = [0, 1], sizes = [4, 128], strides = [1, 1]} : vector<4x142xf32> to vector<4x128xf32>
    %61 = vector.extract_strided_slice %58 {offsets = [0, 2], sizes = [4, 128], strides = [1, 1]} : vector<4x142xf32> to vector<4x128xf32>
    %62 = vector.extract_strided_slice %58 {offsets = [0, 3], sizes = [4, 128], strides = [1, 1]} : vector<4x142xf32> to vector<4x128xf32>
    %63 = vector.extract_strided_slice %58 {offsets = [0, 4], sizes = [4, 128], strides = [1, 1]} : vector<4x142xf32> to vector<4x128xf32>
    %64 = vector.extract_strided_slice %58 {offsets = [0, 5], sizes = [4, 128], strides = [1, 1]} : vector<4x142xf32> to vector<4x128xf32>
    %65 = vector.extract_strided_slice %58 {offsets = [0, 6], sizes = [4, 128], strides = [1, 1]} : vector<4x142xf32> to vector<4x128xf32>
    %66 = vector.extract_strided_slice %58 {offsets = [0, 7], sizes = [4, 128], strides = [1, 1]} : vector<4x142xf32> to vector<4x128xf32>
    %67 = vector.extract_strided_slice %58 {offsets = [0, 8], sizes = [4, 128], strides = [1, 1]} : vector<4x142xf32> to vector<4x128xf32>
    %68 = vector.extract_strided_slice %58 {offsets = [0, 9], sizes = [4, 128], strides = [1, 1]} : vector<4x142xf32> to vector<4x128xf32>
    %69 = vector.extract_strided_slice %58 {offsets = [0, 10], sizes = [4, 128], strides = [1, 1]} : vector<4x142xf32> to vector<4x128xf32>
    %70 = vector.extract_strided_slice %58 {offsets = [0, 11], sizes = [4, 128], strides = [1, 1]} : vector<4x142xf32> to vector<4x128xf32>
    %71 = vector.extract_strided_slice %58 {offsets = [0, 12], sizes = [4, 128], strides = [1, 1]} : vector<4x142xf32> to vector<4x128xf32>
    %72 = vector.extract_strided_slice %58 {offsets = [0, 13], sizes = [4, 128], strides = [1, 1]} : vector<4x142xf32> to vector<4x128xf32>
    %73 = vector.extract_strided_slice %58 {offsets = [0, 14], sizes = [4, 128], strides = [1, 1]} : vector<4x142xf32> to vector<4x128xf32>
    %74 = tpu.concatenate %59, %60, %61, %62, %63, %64, %65, %66, %67, %68, %69, %70, %71, %72, %73 in 0 : vector<4x128xf32>, vector<4x128xf32>, vector<4x128xf32>, vector<4x128xf32>, vector<4x128xf32>, vector<4x128xf32>, vector<4x128xf32>, vector<4x128xf32>, vector<4x128xf32>, vector<4x128xf32>, vector<4x128xf32>, vector<4x128xf32>, vector<4x128xf32>, vector<4x128xf32>, vector<4x128xf32> -> vector<60x128xf32>
    %75 = vector.extract_strided_slice %35 {offsets = [2, 0, 0], sizes = [1, 4, 128], strides = [1, 1, 1]} : vector<4x4x128xf32> to vector<1x4x128xf32>
    %76 = vector.shape_cast %75 : vector<1x4x128xf32> to vector<4x128xf32>
    %77 = tpu.concatenate %36, %76, %36 in 1 : vector<4x7xf32>, vector<4x128xf32>, vector<4x7xf32> -> vector<4x142xf32>
    %78 = vector.extract_strided_slice %77 {offsets = [0, 0], sizes = [4, 128], strides = [1, 1]} : vector<4x142xf32> to vector<4x128xf32>
    %79 = vector.extract_strided_slice %77 {offsets = [0, 1], sizes = [4, 128], strides = [1, 1]} : vector<4x142xf32> to vector<4x128xf32>
    %80 = vector.extract_strided_slice %77 {offsets = [0, 2], sizes = [4, 128], strides = [1, 1]} : vector<4x142xf32> to vector<4x128xf32>
    %81 = vector.extract_strided_slice %77 {offsets = [0, 3], sizes = [4, 128], strides = [1, 1]} : vector<4x142xf32> to vector<4x128xf32>
    %82 = vector.extract_strided_slice %77 {offsets = [0, 4], sizes = [4, 128], strides = [1, 1]} : vector<4x142xf32> to vector<4x128xf32>
    %83 = vector.extract_strided_slice %77 {offsets = [0, 5], sizes = [4, 128], strides = [1, 1]} : vector<4x142xf32> to vector<4x128xf32>
    %84 = vector.extract_strided_slice %77 {offsets = [0, 6], sizes = [4, 128], strides = [1, 1]} : vector<4x142xf32> to vector<4x128xf32>
    %85 = vector.extract_strided_slice %77 {offsets = [0, 7], sizes = [4, 128], strides = [1, 1]} : vector<4x142xf32> to vector<4x128xf32>
    %86 = vector.extract_strided_slice %77 {offsets = [0, 8], sizes = [4, 128], strides = [1, 1]} : vector<4x142xf32> to vector<4x128xf32>
    %87 = vector.extract_strided_slice %77 {offsets = [0, 9], sizes = [4, 128], strides = [1, 1]} : vector<4x142xf32> to vector<4x128xf32>
    %88 = vector.extract_strided_slice %77 {offsets = [0, 10], sizes = [4, 128], strides = [1, 1]} : vector<4x142xf32> to vector<4x128xf32>
    %89 = vector.extract_strided_slice %77 {offsets = [0, 11], sizes = [4, 128], strides = [1, 1]} : vector<4x142xf32> to vector<4x128xf32>
    %90 = vector.extract_strided_slice %77 {offsets = [0, 12], sizes = [4, 128], strides = [1, 1]} : vector<4x142xf32> to vector<4x128xf32>
    %91 = vector.extract_strided_slice %77 {offsets = [0, 13], sizes = [4, 128], strides = [1, 1]} : vector<4x142xf32> to vector<4x128xf32>
    %92 = vector.extract_strided_slice %77 {offsets = [0, 14], sizes = [4, 128], strides = [1, 1]} : vector<4x142xf32> to vector<4x128xf32>
    %93 = tpu.concatenate %78, %79, %80, %81, %82, %83, %84, %85, %86, %87, %88, %89, %90, %91, %92 in 0 : vector<4x128xf32>, vector<4x128xf32>, vector<4x128xf32>, vector<4x128xf32>, vector<4x128xf32>, vector<4x128xf32>, vector<4x128xf32>, vector<4x128xf32>, vector<4x128xf32>, vector<4x128xf32>, vector<4x128xf32>, vector<4x128xf32>, vector<4x128xf32>, vector<4x128xf32>, vector<4x128xf32> -> vector<60x128xf32>
    %94 = vector.extract_strided_slice %35 {offsets = [3, 0, 0], sizes = [1, 4, 128], strides = [1, 1, 1]} : vector<4x4x128xf32> to vector<1x4x128xf32>
    %95 = vector.shape_cast %94 : vector<1x4x128xf32> to vector<4x128xf32>
    %96 = tpu.concatenate %36, %95, %36 in 1 : vector<4x7xf32>, vector<4x128xf32>, vector<4x7xf32> -> vector<4x142xf32>
    %97 = vector.extract_strided_slice %96 {offsets = [0, 0], sizes = [4, 128], strides = [1, 1]} : vector<4x142xf32> to vector<4x128xf32>
    %98 = vector.extract_strided_slice %96 {offsets = [0, 1], sizes = [4, 128], strides = [1, 1]} : vector<4x142xf32> to vector<4x128xf32>
    %99 = vector.extract_strided_slice %96 {offsets = [0, 2], sizes = [4, 128], strides = [1, 1]} : vector<4x142xf32> to vector<4x128xf32>
    %100 = vector.extract_strided_slice %96 {offsets = [0, 3], sizes = [4, 128], strides = [1, 1]} : vector<4x142xf32> to vector<4x128xf32>
    %101 = vector.extract_strided_slice %96 {offsets = [0, 4], sizes = [4, 128], strides = [1, 1]} : vector<4x142xf32> to vector<4x128xf32>
    %102 = vector.extract_strided_slice %96 {offsets = [0, 5], sizes = [4, 128], strides = [1, 1]} : vector<4x142xf32> to vector<4x128xf32>
    %103 = vector.extract_strided_slice %96 {offsets = [0, 6], sizes = [4, 128], strides = [1, 1]} : vector<4x142xf32> to vector<4x128xf32>
    %104 = vector.extract_strided_slice %96 {offsets = [0, 7], sizes = [4, 128], strides = [1, 1]} : vector<4x142xf32> to vector<4x128xf32>
    %105 = vector.extract_strided_slice %96 {offsets = [0, 8], sizes = [4, 128], strides = [1, 1]} : vector<4x142xf32> to vector<4x128xf32>
    %106 = vector.extract_strided_slice %96 {offsets = [0, 9], sizes = [4, 128], strides = [1, 1]} : vector<4x142xf32> to vector<4x128xf32>
    %107 = vector.extract_strided_slice %96 {offsets = [0, 10], sizes = [4, 128], strides = [1, 1]} : vector<4x142xf32> to vector<4x128xf32>
    %108 = vector.extract_strided_slice %96 {offsets = [0, 11], sizes = [4, 128], strides = [1, 1]} : vector<4x142xf32> to vector<4x128xf32>
    %109 = vector.extract_strided_slice %96 {offsets = [0, 12], sizes = [4, 128], strides = [1, 1]} : vector<4x142xf32> to vector<4x128xf32>
    %110 = vector.extract_strided_slice %96 {offsets = [0, 13], sizes = [4, 128], strides = [1, 1]} : vector<4x142xf32> to vector<4x128xf32>
    %111 = vector.extract_strided_slice %96 {offsets = [0, 14], sizes = [4, 128], strides = [1, 1]} : vector<4x142xf32> to vector<4x128xf32>
    %112 = tpu.concatenate %97, %98, %99, %100, %101, %102, %103, %104, %105, %106, %107, %108, %109, %110, %111 in 0 : vector<4x128xf32>, vector<4x128xf32>, vector<4x128xf32>, vector<4x128xf32>, vector<4x128xf32>, vector<4x128xf32>, vector<4x128xf32>, vector<4x128xf32>, vector<4x128xf32>, vector<4x128xf32>, vector<4x128xf32>, vector<4x128xf32>, vector<4x128xf32>, vector<4x128xf32>, vector<4x128xf32> -> vector<60x128xf32>
    %113 = tpu.concatenate %55, %74, %93, %112 in 1 : vector<60x128xf32>, vector<60x128xf32>, vector<60x128xf32>, vector<60x128xf32> -> vector<60x512xf32>
    %c0_14 = arith.constant 0 : index
    %c0_15 = arith.constant 0 : index
    %114 = vector.load %arg4[%c0_14, %c0_15] : memref<8x60xf32, #tpu.memory_space<vmem>>, vector<8x60xf32>
    %cst_16 = arith.constant dense<0.000000e+00> : vector<8x512xf32>
    %115 = tpu.matmul %114, %113, %cst_16 {dimension_numbers = #tpu.dot_dimension_numbers<[1], [0], [0], [1], [0, 0, 1, 1], [], []>} : vector<8x60xf32>, vector<60x512xf32>, vector<8x512xf32> -> vector<8x512xf32>
    %c0_17 = arith.constant 0 : index
    %c0_18 = arith.constant 0 : index
    %116 = vector.load %arg5[%c0_17, %c0_18] : memref<8x1xf32, #tpu.memory_space<vmem>>, vector<8x1xf32>
    %117 = vector.broadcast %116 : vector<8x1xf32> to vector<8x512xf32>
    %118 = arith.addf %115, %117 : vector<8x512xf32>
    %119 = vector.extract_strided_slice %118 {offsets = [0, 0], sizes = [8, 128], strides = [1, 1]} : vector<8x512xf32> to vector<8x128xf32>
    %c0_19 = arith.constant 0 : index
    %c0_20 = arith.constant 0 : index
    %c0_21 = arith.constant 0 : index
    %120 = vector.load %arg6[%c0_19, %c0_20, %c0_21] : memref<4x8x128xf32, #tpu.memory_space<vmem>>, vector<1x8x128xf32>
    %121 = vector.shape_cast %120 : vector<1x8x128xf32> to vector<8x128xf32>
    %122 = vector.shape_cast %119 : vector<8x128xf32> to vector<1x8x128xf32>
    tpu.vector_store %arg6[%c0_19, %c0_20, %c0_21], %122 {strides = array<i32>} : memref<4x8x128xf32, #tpu.memory_space<vmem>>, vector<1x8x128xf32>,
    %123 = vector.extract_strided_slice %118 {offsets = [0, 128], sizes = [8, 128], strides = [1, 1]} : vector<8x512xf32> to vector<8x128xf32>
    %c1 = arith.constant 1 : index
    %c0_22 = arith.constant 0 : index
    %c0_23 = arith.constant 0 : index
    %124 = vector.load %arg6[%c1, %c0_22, %c0_23] : memref<4x8x128xf32, #tpu.memory_space<vmem>>, vector<1x8x128xf32>
    %125 = vector.shape_cast %124 : vector<1x8x128xf32> to vector<8x128xf32>
    %126 = vector.shape_cast %123 : vector<8x128xf32> to vector<1x8x128xf32>
    tpu.vector_store %arg6[%c1, %c0_22, %c0_23], %126 {strides = array<i32>} : memref<4x8x128xf32, #tpu.memory_space<vmem>>, vector<1x8x128xf32>,
    %127 = vector.extract_strided_slice %118 {offsets = [0, 256], sizes = [8, 128], strides = [1, 1]} : vector<8x512xf32> to vector<8x128xf32>
    %c2 = arith.constant 2 : index
    %c0_24 = arith.constant 0 : index
    %c0_25 = arith.constant 0 : index
    %128 = vector.load %arg6[%c2, %c0_24, %c0_25] : memref<4x8x128xf32, #tpu.memory_space<vmem>>, vector<1x8x128xf32>
    %129 = vector.shape_cast %128 : vector<1x8x128xf32> to vector<8x128xf32>
    %130 = vector.shape_cast %127 : vector<8x128xf32> to vector<1x8x128xf32>
    tpu.vector_store %arg6[%c2, %c0_24, %c0_25], %130 {strides = array<i32>} : memref<4x8x128xf32, #tpu.memory_space<vmem>>, vector<1x8x128xf32>,
    %131 = vector.extract_strided_slice %118 {offsets = [0, 384], sizes = [8, 128], strides = [1, 1]} : vector<8x512xf32> to vector<8x128xf32>
    %c3 = arith.constant 3 : index
    %c0_26 = arith.constant 0 : index
    %c0_27 = arith.constant 0 : index
    %132 = vector.load %arg6[%c3, %c0_26, %c0_27] : memref<4x8x128xf32, #tpu.memory_space<vmem>>, vector<1x8x128xf32>
    %133 = vector.shape_cast %132 : vector<1x8x128xf32> to vector<8x128xf32>
    %134 = vector.shape_cast %131 : vector<8x128xf32> to vector<1x8x128xf32>
    tpu.vector_store %arg6[%c3, %c0_26, %c0_27], %134 {strides = array<i32>} : memref<4x8x128xf32, #tpu.memory_space<vmem>>, vector<1x8x128xf32>,
    return
  }
  func.func @transform_0(%arg0: i32) -> (i32, i32, i32) {
    %c0_i32 = arith.constant 0 : i32
    %c0_i32_0 = arith.constant 0 : i32
    %c0_i32_1 = arith.constant 0 : i32
    return %arg0, %c0_i32, %c0_i32_0 : i32, i32, i32
  }
  func.func @transform_1(%arg0: i32) -> (i32, i32) {
    %c0_i32 = arith.constant 0 : i32
    %c0_i32_0 = arith.constant 0 : i32
    %c0_i32_1 = arith.constant 0 : i32
    return %c0_i32, %c0_i32_0 : i32, i32
  }
  func.func @transform_2(%arg0: i32) -> (i32, i32) {
    %c0_i32 = arith.constant 0 : i32
    %c0_i32_0 = arith.constant 0 : i32
    %c0_i32_1 = arith.constant 0 : i32
    return %c0_i32, %c0_i32_0 : i32, i32
  }
  func.func @transform_3(%arg0: i32) -> (i32, i32) {
    %c0_i32 = arith.constant 0 : i32
    %c0_i32_0 = arith.constant 0 : i32
    %c0_i32_1 = arith.constant 0 : i32
    return %c0_i32, %c0_i32_0 : i32, i32
  }
  func.func @transform_4(%arg0: i32) -> (i32, i32) {
    %c0_i32 = arith.constant 0 : i32
    %c0_i32_0 = arith.constant 0 : i32
    %c0_i32_1 = arith.constant 0 : i32
    return %c0_i32, %c0_i32_0 : i32, i32
  }
  func.func @transform_5(%arg0: i32) -> (i32, i32, i32) {
    %c0_i32 = arith.constant 0 : i32
    %c0_i32_0 = arith.constant 0 : i32
    %c0_i32_1 = arith.constant 0 : i32
    return %arg0, %c0_i32, %c0_i32_0 : i32, i32, i32
  }
}

</mosaic_0001>

<bundles_post_ra>
// kernel: tpu_custom_call.1
= control target key start
LH: loop header
LB: loop body
LE: loop exit
PB: predicated region body
PF: predicated region fallthrough
CT: control target
= control target key end

     0   :  { %10 = vsyncpa [#allocation3], 0  ;;  %s2160_s0 = inlined_call_operand.hbm [shape: f32[8,4,128], index: 0, kind: input, shape index: {}]   ;;  %s2161_s1 = inlined_call_operand.vmem [shape: f32[4,1], index: 1, kind: input, shape index: {}]   ;;  %s2162_s2 = inlined_call_operand.vmem [shape: f32[4,1], index: 2, kind: input, shape index: {}]   ;;  %s2163_s3 = inlined_call_operand.vmem [shape: f32[8,60], index: 3, kind: input, shape index: {}]   ;;  %s2164_s4 = inlined_call_operand.vmem [shape: f32[8,1], index: 4, kind: input, shape index: {}]   ;;  %s2165_s5 = inlined_call_operand.hbm [shape: f32[8,8,128], index: 5, kind: output, shape index: {}]  }
   0x1   :  { %12 = vsyncpa [#allocation3 + $0x1], 0 }
   0x2   :  { %13 = vsyncpa [#allocation4], 0 }
   0x3   :  { %15 = vsyncpa [#allocation4 + $0x1], 0  ;;  %s1644_s18 = smov 0   ;;  %s1646_s19 = smov 0  }
   0x4   :  { %s1648_s20 = smov 0   ;;  %s1650_s21 = smov 0  }
   0x5 LB: > { %s1665_s22 = sadd.s32 4294967295, %s1588_s21   ;;  %s1055_s23 = sadd.s32 4294967294, %s1588_s21   ;;  %s1588_s21 = sphi %s1650_s21, %s2180_s21   ;;  %s1584_s20 = sphi %s1648_s20, %s2179_s20   ;;  %s1580_s19 = sphi %s1646_s19, %s2178_s19   ;;  %s1576_s18 = sphi %s1644_s18, %s2177_s18  }
   0x6   : > { %s1669_s24 = sadd.s32 1, %s1588_s21   ;;  %s28_s25 = sadd.s32 1, %s1584_s20 }
   0x7   : > { %s25_s26 = ssub.s32 %s1588_s21, %s1669_s24  ;;  %p35_p0 = scmp.ne.s32.totalorder %s1584_s20, %s1580_s19 }
   0x8   : > { %p26_p1 = scmp.eq.s32.totalorder %s25_s26, 0  ;;  %p36_p2 = scmp.eq.s32.totalorder %s1588_s21, 0 }
   0x9   : > { %p41_p3 = scmp.ne.s32.totalorder %s1580_s19, %s1576_s18  ;;  %p42_p4 = scmp.eq.s32.totalorder %s1665_s22, 0 }
   0xa   : > { %s1681_s27 = scalar_select %p26_p1, %s1584_s20, %s28_s25  }
   0xb   : > { %p1683_p5 = por %p36_p2, %p35_p0  ;;  %p1687_p6 = por %p42_p4, %p41_p3 }
   0xc   : > { %p149_p7 = scmp.eq.s32.totalorder %s1665_s22, 1  ;;  %p155_p8 = scmp.eq.s32.totalorder %s1055_s23, 1 }
   0xd   : > { %p1128_p10 = scmp.lt.s32.totalorder %s1588_s21, 2  ;;  %s187_s7 = sand.u32 1, %s1584_s20  }
   0xe   : > { %p1694_p11 = por %p149_p7, %p35_p0  ;;  %p1698_p12 = por %p155_p8, %p41_p3 }
   0xf   : > { %s1078_s8 = sshll.u32 %s1588_s21, 8  ;;  %s1058_s9 = sshll.u32 %s187_s7, 4 }
  0x10   : > { %s2169_s30 = scalar_select %p1694_p11, 1, 0 }
  0x11   : > { %s2170_s6 = scalar_select %p1698_p12, 1, 0 }
  0x12   : > { %s1707_s12 = scalar_lea.hbm %s2160_s0, %s1078_s8  ;;  %s191_s13 = scalar_lea.vmem [#allocation2], %s1058_s9 }
  0x13   : > { %s198_s14 = sshll.u32 %s191_s13, 4  ;;  %p1711_p13 = pnand %p1128_p10, %p1683_p5  ;;  %s1715_s14 = int_to_ptr.vmem [resolvable:$true] %s198_s14 }
  0x14   : > { %s1717_s16 = scalar_lea.sflag [#allocation3], %s187_s7  ;;  %s1492_s17 = scalar_lea.hbm %s1707_s12, 256 }
  0x15   : > { %p1493_p0 = scmp.ne.s32.totalorder %s1707_s12, %s1492_s17  ;;  %p1494_p1 = pneg %p1711_p13 }
  0x16   : > { %s1497_s26 = scalar_lea.hbm %s2160_s0, 512  ;;  %p1498_p4 = scmp.lt.u32.totalorder %s1707_s12, %s2160_s0 }
  0x17   : > { %p1495_p2 = pnand %p1494_p1, %p1493_p0  ;;  %p1499_p5 = scmp.lt.u32.totalorder %s1497_s26, %s1492_s17 }
  0x18   : > { %p1501_p8 = scmp.lt.u32.totalorder %s1492_s17, %s1707_s12 }
  0x19   : > { %p1496_p3 = pneg %p1495_p2  ;;  %p1500_p7 = por %p1499_p5, %p1498_p4 }
  0x1b   : > { %p1502_p10 = por %p1501_p8, %p1500_p7 }
  0x1d   : > { %p1503_p9 = pnand %p1502_p10, %p1496_p3 }
  0x1f   : > { %1506 = shalt.err (!%p1503_p9)
}
  0x20   : > { %s1507_s7 = scalar_lea.vmem %s1715_s14, 256  ;;  %s1590_s9 = smov [#allocation2]  }
  0x21   : > { %p1508_p0 = scmp.ne.s32.totalorder %s1715_s14, %s1507_s7  ;;  %s1512_s10 = sshll.u32 %s1590_s9, 4  ;;  %s1513_s10 = int_to_ptr.vmem [resolvable:$false] %s1512_s10 }
  0x22   : > { %s1514_s11 = scalar_lea.vmem %s1513_s10, 512  ;;  %p1515_p11 = scmp.lt.s32.totalorder %s1715_s14, %s1513_s10 }
  0x23   : > { %p1510_p2 = pnand %p1508_p0, %p1494_p1  ;;  %p1516_p4 = scmp.lt.s32.totalorder %s1514_s11, %s1507_s7 }
  0x25   : > { %p1511_p12 = pneg %p1510_p2  ;;  %p1517_p5 = por %p1516_p4, %p1515_p11 }
  0x27   : > { %p1518_p7 = pnand %p1517_p5, %p1511_p12 }
  0x29   : > { %1521 = shalt.err (!%p1518_p7)
}
  0x2a   : > { %s1591_s13 = smov 64   ;;  %s1592_s17 = smov 4  }
  0x2b   : > { %1123 = dma.hbm_to_vmem [thread:$0]  (!%p1711_p13), %s1707_s12, 256, %s1715_s14, %s1717_s16, %s1591_s13, %s1591_s13, %s1592_s17  }
  0x2c   : > { %p1061_p9 = scmp.ge.s32.totalorder %s1588_s21, 1  ;;  %p206_p1 = scmp.lt.s32.totalorder %s1588_s21, 3 }
  0x2e   : > { %p207_p3 = pnand %p1061_p9, %p206_p1 }
  0x2f   : > { %s1748_s23 = sand.u32 (!%p207_p3), 1, %s1580_s19  }
  0x30   : > { %210 = sbr.rel (%p207_p3) target bundleno = 978 (0x3d2), region = 40  ;;  %s1062_s25 = sshll.u32 (!%p207_p3), %s1748_s23, 4 }
  0x31   : > { %s213_s26 = scalar_lea.sflag (!%p207_p3), [#allocation3], %s1748_s23  ;;  %s216_s28 = scalar_lea.vmem (!%p207_p3), [#allocation2], %s1062_s25 }
  0x37   : > { %1567 = dma.done.wait (%p1687_p6), %s213_s26, 256  }
  0x38   : > { %1569 = vsyncadd (%p1687_p6), %s213_s26, 4294967040  ;;  %vm249_vm0 = vcmask 1043456   ;;  %v1756_v0 = vld [vmem:[%s216_s28 + $0x4] sm:$0xf]  ;;  %v1758_v1 = vld [vmem:[%s216_s28] sm:$0xf] }
  0x39   : > { %v1760_v2 = vld [vmem:[%s216_s28 + $0xc] sm:$0xf]  ;;  %v253_v3 = vsel %vm249_vm0, %v1756_v0, 0.0  ;;  %v250_v4 = vsel %vm249_vm0, %v1758_v1, 0.0  ;;  %v1766_v5 = vld [vmem:[%s216_s28 + $0x8] sm:$0xf]  ;;  %v268_v8 = vmul.f32 %v1756_v0, %v1756_v0  ;;  %v267_v12 = vmul.f32 %v1758_v1, %v1758_v1 }
  0x3a   : > { %254 = vadd.xlane.f32.xlu0 %v253_v3  ;;  %251 = vadd.xlane.f32.xlu1 %v250_v4  ;;  %v259_v6 = vsel %vm249_vm0, %v1760_v2, 0.0  ;;  %v256_v7 = vsel %vm249_vm0, %v1766_v5, 0.0  ;;  %v270_v9 = vmul.f32 %v1760_v2, %v1760_v2  ;;  %v269_v13 = vmul.f32 %v1766_v5, %v1766_v5  ;;  %v295_v45 = vld [vmem:[%s2161_s1] sm:$0xf]  ;;  %s1594_s16 = smov 7   ;;  %s1595_s8 = smov 126  }
  0x3b   : > { %v274_v10 = vsel %vm249_vm0, %v268_v8, 0.0  ;;  %v271_v14 = vsel %vm249_vm0, %v267_v12, 0.0  ;;  %v1593_v16 = vmov 0   ;;  %v308_v55 = vld [vmem:[%s2162_s2] sm:$0xf]  ;;  %vm389_vm1 = vcmask 56320  }
  0x3c   : > { %v280_v11 = vsel %vm249_vm0, %v270_v9, 0.0  ;;  %v277_v15 = vsel %vm249_vm0, %v269_v13, 0.0  ;;  %1185 = vset.pattern.permute.xlu1 %v1593_v16  ;;  %1184 = vset.pattern.permute.xlu0 %v1593_v16  ;;  %s1596_s7 = smov 124   ;;  %s1597_s9 = smov 127   ;;  %vm407_vm2 = vcmask 1031168   ;;  %vm400_vm3 = vcmask 1039360  }
  0x3d   : > { %s1598_s10 = smov 122   ;;  %s1599_s11 = smov 125   ;;  %vm414_vm4 = vcmask 1022976   ;;  %vm428_vm5 = vcmask 1006592   ;;  %vm435_vm6 = vcmask 998400   ;;  %vm442_vm7 = vcmask 990208  }
  0x3e   : > { %260 = vadd.xlane.f32.xlu0 %v259_v6  ;;  %257 = vadd.xlane.f32.xlu1 %v256_v7  ;;  %s1600_s13 = smov 116   ;;  %s1601_s17 = smov 114   ;;  %vm421_vm8 = vcmask 1014784   ;;  %vm456_vm9 = vcmask 973824   ;;  %vm463_vm10 = vcmask 965632   ;;  %vm470_vm11 = vcmask 957440  }
  0x3f   : > { %s1602_s25 = smov 123   ;;  %s1603_s26 = smov 121   ;;  %vm449_vm12 = vcmask 982016   ;;  %vm491_vm13 = vcmask 932864   ;;  %vm484_vm14 = vcmask 941056   ;;  %vm477_vm15 = vcmask 949248  }
  0x40   : > { %s1604_s28 = smov 120   ;;  %s1605_s29 = smov 118  }
  0x41   : > { %s1606_s12 = smov 119   ;;  %s1607_s14 = smov 117  }
  0x42   : > { %275 = vadd.xlane.f32.xlu0 %v274_v10  ;;  %281 = vadd.xlane.f32.xlu1 %v280_v11  ;;  %s1608_s15 = smov 115   ;;  %p2174_p11 = scmp.ne.s32.totalorder %s2169_s30, 0 }
  0x46   : > { %272 = vadd.xlane.f32.xlu0 %v271_v14  ;;  %278 = vadd.xlane.f32.xlu1 %v277_v15 }
  0xc7   : > { %v255_v17 = vpop.xlane.xlu0 %254  ;;  %v252_v18 = vpop.xlane.xlu1 %251 }
  0xc8   : > { %v264_v21 = vmul.f32 0.0078125, %v255_v17  ;;  %v263_v23 = vmul.f32 0.0078125, %v252_v18 }
  0xca   : > { %v288_v27 = vmul.f32 %v264_v21, %v264_v21  ;;  %v287_v33 = vmul.f32 %v263_v23, %v263_v23 }
  0xcb   : > { %v261_v19 = vpop.xlane.xlu0 %260  ;;  %v258_v20 = vpop.xlane.xlu1 %257 }
  0xcc   : > { %v266_v22 = vmul.f32 0.0078125, %v261_v19  ;;  %v265_v24 = vmul.f32 0.0078125, %v258_v20 }
  0xce   : > { %v290_v28 = vmul.f32 %v266_v22, %v266_v22  ;;  %v289_v34 = vmul.f32 %v265_v24, %v265_v24 }
  0xcf   : > { %v276_v25 = vpop.xlane.xlu0 %275  ;;  %v282_v26 = vpop.xlane.xlu1 %281 }
  0xd0   : > { %v284_v29 = vmul.f32 0.0078125, %v276_v25  ;;  %v286_v30 = vmul.f32 0.0078125, %v282_v26 }
  0xd2   : > { %v292_v31 = vsub.f32 %v284_v29, %v288_v27  ;;  %v294_v32 = vsub.f32 %v286_v30, %v290_v28 }
  0xd3   : > { %v273_v35 = vpop.xlane.xlu0 %272  ;;  %v279_v36 = vpop.xlane.xlu1 %278 }
  0xd4   : > { %v297_v37 = vadd.f32 1e-05, %v292_v31  ;;  %v299_v38 = vadd.f32 1e-05, %v294_v32  ;;  %v283_v39 = vmul.f32 0.0078125, %v273_v35  ;;  %v285_v40 = vmul.f32 0.0078125, %v279_v36 }
  0xd6   : > { %1476 = vrsqrt.f32 %v297_v37  ;;  %v291_v41 = vsub.f32 %v283_v39, %v287_v33  ;;  %v293_v42 = vsub.f32 %v285_v40, %v289_v34 }
  0xd7   : > { %1478 = vrsqrt.f32 %v299_v38 }
  0xd8   : > { %v296_v43 = vadd.f32 1e-05, %v291_v41  ;;  %v298_v44 = vadd.f32 1e-05, %v293_v42 }
  0xda   : > { %1480 = vrsqrt.f32 %v296_v43 }
  0xdb   : > { %1482 = vrsqrt.f32 %v298_v44 }
  0xe0   : > { %v1477_v46 = vpop.eup %1476 }
  0xe1   : > { %v1479_v47 = vpop.eup %1478  ;;  %v305_v48 = vmul.f32 %v1477_v46, %v295_v45 }
  0xe2   : > { %v307_v49 = vmul.f32 %v1479_v47, %v295_v45 }
  0xe3   : > { %324 = vperm.xlu0 %1184, %v305_v48   ;;  %v310_v54 = vmul.f32 %v305_v48, %v264_v21 }
  0xe4   : > { %v1481_v50 = vpop.eup %1480  ;;  %334 = vperm.xlu1 %1185, %v307_v49   ;;  %v312_v57 = vmul.f32 %v307_v49, %v266_v22 }
  0xe5   : > { %v304_v51 = vmul.f32 %v1481_v50, %v295_v45  ;;  %v1483_v52 = vpop.eup %1482  ;;  %v314_v56 = vsub.f32 %v308_v55, %v310_v54 }
  0xe6   : > { %v306_v53 = vmul.f32 %v1483_v52, %v295_v45  ;;  %v316_v58 = vsub.f32 %v308_v55, %v312_v57 }
  0xe7   : > { %v309_v59 = vmul.f32 %v304_v51, %v263_v23 }
  0xe8   : > { %319 = vperm.xlu1 %1185, %v304_v51   ;;  %v311_v61 = vmul.f32 %v306_v53, %v265_v24 }
  0xe9   : > { %v313_v60 = vsub.f32 %v308_v55, %v309_v59 }
  0xea   : > { %v315_v62 = vsub.f32 %v308_v55, %v311_v61 }
  0xec   : > { %329 = vperm.xlu1 %1185, %v306_v53  }
  0xf0   : > { %348 = vperm.xlu1 %1185, %v314_v56  }
  0xf4   : > { %358 = vperm.xlu1 %1185, %v316_v58  }
  0xf8   : > { %343 = vperm.xlu1 %1185, %v313_v60  }
  0xfc   : > { %353 = vperm.xlu1 %1185, %v315_v62  }
 0x162   : > { %v325_v4 = vpop.permute.xlu0 %324 }
 0x163   : > { %v335_v63 = vpop.permute.xlu1 %334  ;;  %v338_v7 = vmul.f32 %v325_v4, %v1756_v0 }
 0x164   : > { %v340_v10 = vmul.f32 %v335_v63, %v1760_v2 }
 0x167   : > { %v320_v3 = vpop.permute.xlu1 %319 }
 0x168   : > { %v337_v14 = vmul.f32 %v320_v3, %v1758_v1 }
 0x16b   : > { %v330_v6 = vpop.permute.xlu1 %329 }
 0x16c   : > { %v339_v18 = vmul.f32 %v330_v6, %v1766_v5 }
 0x16f   : > { %v349_v8 = vpop.permute.xlu1 %348 }
 0x170   : > { %v362_v9 = vadd.f32 %v349_v8, %v338_v7  ;;  %v1609_v7 = vmov 0.0   ;;  %v801_v8 = vld [vmem:[%s2164_s4] sm:$0xff] }
 0x171   : > { %883 = vmatprep.mubr.f32.mxu0 %v1609_v7  ;;  %954 = vmatprep.mubr.f32.mxu1 %v1609_v7 }
 0x172   : > { %v370_v11 = vmul.f32 0.70710677, %v362_v9  ;;  %v366_v24 = vmul.f32 0.5, %v362_v9 }
 0x173   : > { %v359_v12 = vpop.permute.xlu1 %358 }
 0x174   : > { %1484 = verf.f32 %v370_v11  ;;  %v364_v13 = vadd.f32 %v359_v12, %v340_v10 }
 0x176   : > { %v372_v15 = vmul.f32 0.70710677, %v364_v13  ;;  %v368_v25 = vmul.f32 0.5, %v364_v13 }
 0x177   : > { %v344_v16 = vpop.permute.xlu1 %343 }
 0x178   : > { %1486 = verf.f32 %v372_v15  ;;  %v361_v17 = vadd.f32 %v344_v16, %v337_v14 }
 0x17a   : > { %v369_v19 = vmul.f32 0.70710677, %v361_v17  ;;  %v365_v31 = vmul.f32 0.5, %v361_v17 }
 0x17b   : > { %v354_v20 = vpop.permute.xlu1 %353 }
 0x17c   : > { %1488 = verf.f32 %v369_v19  ;;  %v363_v0 = vadd.f32 %v354_v20, %v339_v18 }
 0x17e   : > { %v1485_v21 = vpop.eup %1484  ;;  %v371_v22 = vmul.f32 0.70710677, %v363_v0  ;;  %v367_v32 = vmul.f32 0.5, %v363_v0 }
 0x17f   : > { %v378_v2 = vadd.f32 1.0, %v1485_v21 }
 0x180   : > { %1490 = verf.f32 %v371_v22 }
 0x181   : > { %v382_v27 = vmul.f32 %v378_v2, %v366_v24 }
 0x182   : > { %v1487_v23 = vpop.eup %1486 }
 0x183   : > { %v380_v26 = vadd.f32 1.0, %v1487_v23 }
 0x185   : > { %v384_v1 = vmul.f32 %v380_v26, %v368_v25 }
 0x186   : > { %v1489_v28 = vpop.eup %1488 }
 0x187   : > { %v1186_v29 = vpack.i.bf16 %v384_v1, %v382_v27  ;;  %v377_v30 = vadd.f32 1.0, %v1489_v28 }
 0x189   : > { %1187 = vrot.lane.b32.xlu1 %v1186_v29, %s1594_s16  ;;  %v381_v34 = vmul.f32 %v377_v30, %v365_v31 }
 0x18a   : > { %v1491_v5 = vpop.eup %1490 }
 0x18b   : > { %v379_v33 = vadd.f32 1.0, %v1491_v5 }
 0x18d   : > { %v383_v35 = vmul.f32 %v379_v33, %v367_v32 }
 0x18f   : > { %v1191_v36 = vpack.i.bf16 %v383_v35, %v381_v34 }
 0x191   : > { %1192 = vrot.lane.b32.xlu0 %v1191_v36, %s1594_s16 }
 0x1fb   : > { %v1188_v37 = vpop.permute.xlu1 %1187 }
 0x1fc   : > { %v1190_v38 = vunpack.i.h.bf16 %v1188_v37  ;;  %v1189_v39 = vunpack.i.l.bf16 %v1188_v37 }
 0x1fe   : > { %v1795_v40 = vsel %vm389_vm1, 0.0, %v1190_v38  ;;  %v705_v41 = vsel %vm389_vm1, %v1190_v38, 0.0  ;;  %v1799_v42 = vsel %vm389_vm1, 0.0, %v1189_v39  ;;  %v505_v43 = vsel %vm389_vm1, %v1189_v39, 0.0 }
 0x1ff   : > { %v1803_v44 = vpack.i.bf16 %v705_v41, %v1795_v40  ;;  %v1806_v45 = vpack.i.bf16 %v505_v43, %v1799_v42  ;;  %v708_v46 = vrot.slane %v1795_v40, 4  ;;  %v709_v47 = vrot.slane %v705_v41, 4 }
 0x200   : > { %v508_v60 = vrot.slane %v1799_v42, 4  ;;  %v509_v61 = vrot.slane %v505_v43, 4 }
 0x201   : > { %1202 = vrot.lane.b32.xlu1 %v1803_v44, %s1595_s8  ;;  %1197 = vrot.lane.b32.xlu0 %v1806_v45, %s1595_s8  ;;  %v1811_v51 = vpack.i.bf16 %v709_v47, %v708_v46 }
 0x202   : > { %v1446_v63 = vpack.i.bf16 %v509_v61, %v508_v60 }
 0x203   : > { %v1193_v48 = vpop.permute.xlu0 %1192 }
 0x204   : > { %v1195_v49 = vunpack.i.h.bf16 %v1193_v48  ;;  %v1194_v50 = vunpack.i.l.bf16 %v1193_v48 }
 0x206   : > { %v1814_v52 = vsel %vm389_vm1, 0.0, %v1195_v49  ;;  %v605_v53 = vsel %vm389_vm1, %v1195_v49, 0.0  ;;  %v1818_v54 = vsel %vm389_vm1, 0.0, %v1194_v50  ;;  %v391_v55 = vsel %vm389_vm1, %v1194_v50, 0.0 }
 0x207   : > { %v1822_v56 = vpack.i.bf16 %v605_v53, %v1814_v52  ;;  %v1825_v57 = vpack.i.bf16 %v391_v55, %v1818_v54  ;;  %v608_v58 = vrot.slane %v1814_v52, 4  ;;  %v609_v59 = vrot.slane %v605_v53, 4 }
 0x208   : > { %v394_v3 = vrot.slane %v1818_v54, 4  ;;  %v395_v4 = vrot.slane %v391_v55, 4  ;;  %vm1610_vm1 = vmmov 1  }
 0x209   : > { %1212 = vrot.lane.b32.xlu1 %v1822_v56, %s1595_s8  ;;  %1207 = vrot.lane.b32.xlu0 %v1825_v57, %s1595_s8  ;;  %v1834_v62 = vpack.i.bf16 %v609_v59, %v608_v58 }
 0x20a   : > { %v1386_v6 = vpack.i.bf16 %v395_v4, %v394_v3 }
 0x20d   : > { %1217 = vrot.lane.b32.xlu1 %v1806_v45, %s1596_s7  ;;  %1317 = vrot.lane.b32.xlu0 %v1811_v51, %s1597_s9 }
 0x211   : > { %1222 = vrot.lane.b32.xlu1 %v1806_v45, %s1598_s10  ;;  %1322 = vrot.lane.b32.xlu0 %v1811_v51, %s1599_s11 }
 0x215   : > { %1227 = vrot.lane.b32.xlu1 %v1803_v44, %s1596_s7  ;;  %1347 = vrot.lane.b32.xlu0 %v1822_v56, %s1600_s13 }
 0x219   : > { %1232 = vrot.lane.b32.xlu1 %v1803_v44, %s1598_s10  ;;  %1352 = vrot.lane.b32.xlu0 %v1803_v44, %s1601_s17 }
 0x21d   : > { %1237 = vrot.lane.b32.xlu1 %v1825_v57, %s1596_s7  ;;  %1357 = vrot.lane.b32.xlu0 %v1834_v62, %s1597_s9 }
 0x221   : > { %1242 = vrot.lane.b32.xlu1 %v1825_v57, %s1598_s10  ;;  %1362 = vrot.lane.b32.xlu0 %v1834_v62, %s1599_s11 }
 0x225   : > { %1247 = vrot.lane.b32.xlu1 %v1822_v56, %s1596_s7  ;;  %1367 = vrot.lane.b32.xlu0 %v1446_v63, %s1602_s25 }
 0x229   : > { %1252 = vrot.lane.b32.xlu1 %v1822_v56, %s1598_s10  ;;  %1372 = vrot.lane.b32.xlu0 %v1446_v63, %s1603_s26  ;;  %s1063_s10 = sshll.u32 %s1748_s23, 5 }
 0x22d   : > { %1257 = vrot.lane.b32.xlu1 %v1806_v45, %s1604_s28  ;;  %1377 = vrot.lane.b32.xlu0 %v1811_v51, %s1602_s25 }
 0x231   : > { %1262 = vrot.lane.b32.xlu1 %v1806_v45, %s1605_s29  ;;  %1382 = vrot.lane.b32.xlu0 %v1811_v51, %s1603_s26 }
 0x235   : > { %1267 = vrot.lane.b32.xlu1 %v1803_v44, %s1604_s28  ;;  %1387 = vrot.lane.b32.xlu0 %v1386_v6, %s1602_s25 }
 0x239   : > { %1272 = vrot.lane.b32.xlu1 %v1803_v44, %s1605_s29  ;;  %1392 = vrot.lane.b32.xlu0 %v1386_v6, %s1603_s26 }
 0x23d   : > { %1277 = vrot.lane.b32.xlu1 %v1825_v57, %s1604_s28  ;;  %1397 = vrot.lane.b32.xlu0 %v1834_v62, %s1602_s25 }
 0x241   : > { %1282 = vrot.lane.b32.xlu1 %v1825_v57, %s1605_s29  ;;  %1402 = vrot.lane.b32.xlu0 %v1834_v62, %s1603_s26 }
 0x245   : > { %1287 = vrot.lane.b32.xlu1 %v1822_v56, %s1604_s28  ;;  %1407 = vrot.lane.b32.xlu0 %v1446_v63, %s1606_s12 }
 0x249   : > { %1292 = vrot.lane.b32.xlu1 %v1822_v56, %s1605_s29  ;;  %1412 = vrot.lane.b32.xlu0 %v1446_v63, %s1607_s14 }
 0x24d   : > { %1297 = vrot.lane.b32.xlu1 %v1806_v45, %s1600_s13  ;;  %1417 = vrot.lane.b32.xlu0 %v1811_v51, %s1606_s12 }
 0x251   : > { %1302 = vrot.lane.b32.xlu1 %v1803_v44, %s1600_s13  ;;  %1422 = vrot.lane.b32.xlu0 %v1811_v51, %s1607_s14 }
 0x255   : > { %1427 = vrot.lane.b32.xlu0 %v1386_v6, %s1606_s12  ;;  %1307 = vrot.lane.b32.xlu1 %v1446_v63, %s1597_s9 }
 0x259   : > { %1432 = vrot.lane.b32.xlu0 %v1386_v6, %s1607_s14  ;;  %1312 = vrot.lane.b32.xlu1 %v1446_v63, %s1599_s11 }
 0x25d   : > { %1437 = vrot.lane.b32.xlu0 %v1834_v62, %s1606_s12  ;;  %1327 = vrot.lane.b32.xlu1 %v1386_v6, %s1597_s9  ;;  %s1611_s12 = smov [#allocation5]  }
 0x261   : > { %1442 = vrot.lane.b32.xlu0 %v1834_v62, %s1607_s14  ;;  %1332 = vrot.lane.b32.xlu1 %v1386_v6, %s1599_s11  ;;  %s242_s11 = scalar_lea.vmem [#allocation5], %s1063_s10  ;;  %s1526_s14 = sshll.u32 %s1611_s12, 4  ;;  %s1527_s14 = int_to_ptr.vmem [resolvable:$false] %s1526_s14 }
 0x265   : > { %1447 = vrot.lane.b32.xlu0 %v1446_v63, %s1608_s15  ;;  %1337 = vrot.lane.b32.xlu1 %v1825_v57, %s1600_s13  ;;  %s982_s13 = sshll.u32 %s242_s11, 4  ;;  %s2111_s13 = int_to_ptr.vmem [resolvable:$true] %s982_s13 }
 0x266   : > { %s1522_s29 = scalar_lea.vmem %s2111_s13, 512  ;;  %p1529_p8 = scmp.lt.s32.totalorder %s2111_s13, %s1527_s14 }
 0x267   : > { %p1523_p6 = scmp.ne.s32.totalorder %s2111_s13, %s1522_s29 }
 0x269   : > { %1452 = vrot.lane.b32.xlu0 %v1811_v51, %s1608_s15  ;;  %1342 = vrot.lane.b32.xlu1 %v1806_v45, %s1601_s17  ;;  %p1524_p12 = pnand %p1523_p6, %p2174_p11 }
 0x26b   : > { %p1525_p13 = pneg %p1524_p12 }
 0x26d   : > { %1457 = vrot.lane.b32.xlu0 %v1386_v6, %s1608_s15  ;;  %1462 = vrot.lane.b32.xlu1 %v1834_v62, %s1608_s15  ;;  %s1528_s15 = scalar_lea.vmem %s1527_s14, 1024 }
 0x26e   : > { %p1530_p10 = scmp.lt.s32.totalorder %s1528_s15, %s1522_s29 }
 0x270   : > { %p1531_p0 = por %p1530_p10, %p1529_p8 }
 0x271   : > { %1472 = vrot.lane.b32.xlu0 %v1822_v56, %s1601_s17  ;;  %1467 = vrot.lane.b32.xlu1 %v1825_v57, %s1601_s17  ;;  %s1079_s17 = sshll.u32 %s1665_s22, 9  ;;  %s969_s22 = scalar_lea.sflag [#allocation4], %s1748_s23 }
 0x272   : > { %s2116_s28 = scalar_lea.hbm %s2165_s5, %s1079_s17  ;;  %p1532_p2 = pnand %p1531_p0, %p1525_p13 }
 0x273   : > { %v1198_v9 = vpop.permute.xlu0 %1197  ;;  %v1203_v13 = vpop.permute.xlu1 %1202 }
 0x274   : > { %v1200_v10 = vunpack.i.h.bf16 %v1198_v9  ;;  %v1199_v11 = vunpack.i.l.bf16 %v1198_v9  ;;  %v1205_v22 = vunpack.i.h.bf16 %v1203_v13  ;;  %v1204_v2 = vunpack.i.l.bf16 %v1203_v13 }
 0x275   : > { %804 = vperm.xlu1 %1185, %v801_v8  }
 0x276   : > { %v1892_v12 = vsel %vm407_vm2, %v1199_v11, %v1200_v10  ;;  %v720_v1 = vsel %vm407_vm2, %v1204_v2, %v1205_v22 }
 0x27b   : > { %v1213_v14 = vpop.permute.xlu1 %1212  ;;  %v1208_v15 = vpop.permute.xlu0 %1207 }
 0x27c   : > { %v1210_v16 = vunpack.i.h.bf16 %v1208_v15  ;;  %v1209_v17 = vunpack.i.l.bf16 %v1208_v15  ;;  %v1215_v39 = vunpack.i.h.bf16 %v1213_v14  ;;  %v1214_v41 = vunpack.i.l.bf16 %v1213_v14 }
 0x27e   : > { %v1895_v18 = vsel %vm407_vm2, %v1209_v17, %v1210_v16 }
 0x27f   : > { %v1218_v19 = vpop.permute.xlu1 %1217  ;;  %v1318_v20 = vpop.permute.xlu0 %1317 }
 0x280   : > { %v1320_v0 = vunpack.i.h.bf16 %v1318_v20  ;;  %v1319_v21 = vunpack.i.l.bf16 %v1318_v20  ;;  %v1220_v60 = vunpack.i.h.bf16 %v1218_v19  ;;  %v1219_v61 = vunpack.i.l.bf16 %v1218_v19 }
 0x282   : > { %v714_v27 = vsel %vm400_vm3, %v1319_v21, %v1320_v0  ;;  %v532_v8 = vsel %vm421_vm8, %v1219_v61, %v1220_v60 }
 0x283   : > { %v1223_v23 = vpop.permute.xlu1 %1222  ;;  %v1323_v24 = vpop.permute.xlu0 %1322  ;;  %v793_v31 = vsel %vm249_vm0, %v1795_v40, %v714_v27  ;;  %v620_v40 = vsel %vm407_vm2, %v1214_v41, %v1215_v39  ;;  %vm2081_vm2 = vmpackc.low %vm249_vm0, %vm1610_vm1 }
 0x284   : > { %v1325_v25 = vunpack.i.h.bf16 %v1323_v24  ;;  %v1324_v26 = vunpack.i.l.bf16 %v1323_v24  ;;  %v1225_v58 = vunpack.i.h.bf16 %v1223_v23  ;;  %v1224_v59 = vunpack.i.l.bf16 %v1223_v23 }
 0x286   : > { %v726_v28 = vsel %vm414_vm4, %v1324_v26, %v1325_v25 }
 0x287   : > { %v1900_v29 = vpop.permute.xlu1 %1227  ;;  %v1902_v30 = vpop.permute.xlu0 %1347  ;;  %v794_v5 = vsel %vm249_vm0, %v720_v1, %v726_v28 }
 0x288   : > { %v1098_v32 = vpack.c.bf16 %v794_v5, %v793_v31  ;;  %v1230_v20 = vunpack.i.h.bf16 %v1900_v29  ;;  %v1229_v0 = vunpack.i.l.bf16 %v1900_v29 }
 0x28a   : > { %1099 = vmatprep.subr.bf16.mxu1 %v1098_v32  ;;  %v732_v27 = vsel %vm421_vm8, %v1229_v0, %v1230_v20 }
 0x28b   : > { %v1233_v33 = vpop.permute.xlu1 %1232  ;;  %v1907_v34 = vpop.permute.xlu0 %1352 }
 0x28c   : > { %v1235_v17 = vunpack.i.h.bf16 %v1233_v33  ;;  %v1234_v19 = vunpack.i.l.bf16 %v1233_v33 }
 0x28e   : > { %v744_v25 = vsel %vm435_vm6, %v1234_v19, %v1235_v17 }
 0x28f   : > { %v1909_v35 = vpop.permute.xlu1 %1237  ;;  %v1358_v36 = vpop.permute.xlu0 %1357 }
 0x290   : > { %v1360_v37 = vunpack.i.h.bf16 %v1358_v36  ;;  %v1359_v38 = vunpack.i.l.bf16 %v1358_v36  ;;  %v1239_v39 = vunpack.i.l.bf16 %v1909_v35 }
 0x292   : > { %v614_v47 = vsel %vm400_vm3, %v1359_v38, %v1360_v37  ;;  %v1240_v38 = vunpack.i.h.bf16 %v1909_v35 }
 0x293   : > { %v1911_v43 = vpop.permute.xlu1 %1242  ;;  %v1363_v44 = vpop.permute.xlu0 %1362  ;;  %v693_v53 = vsel %vm249_vm0, %v1814_v52, %v614_v47  ;;  %v544_v52 = vsel %vm435_vm6, %v1224_v59, %v1225_v58 }
 0x294   : > { %v1365_v45 = vunpack.i.h.bf16 %v1363_v44  ;;  %v1364_v46 = vunpack.i.l.bf16 %v1363_v44  ;;  %v1245_v36 = vunpack.i.h.bf16 %v1911_v43  ;;  %v1244_v37 = vunpack.i.l.bf16 %v1911_v43 }
 0x296   : > { %v626_v48 = vsel %vm414_vm4, %v1364_v46, %v1365_v45 }
 0x297   : > { %v1916_v49 = vpop.permute.xlu1 %1247  ;;  %v1368_v50 = vpop.permute.xlu0 %1367  ;;  %v694_v51 = vsel %vm249_vm0, %v620_v40, %v626_v48  ;;  %v436_v40 = vsel %vm435_vm6, %v1244_v37, %v1245_v36 }
 0x298   : > { %v1370_v55 = vunpack.i.h.bf16 %v1368_v50  ;;  %v1369_v56 = vunpack.i.l.bf16 %v1368_v50  ;;  %v1100_v57 = vpack.c.bf16 %v694_v51, %v693_v53  ;;  %v422_v50 = vsel %vm421_vm8, %v1239_v39, %v1240_v38 }
 0x299   : > { %v1250_v60 = vunpack.i.h.bf16 %v1916_v49  ;;  %v1249_v61 = vunpack.i.l.bf16 %v1916_v49 }
 0x29a   : > { %1101 = vmatpush1.bf16.msra.mxu1 %v1100_v57  ;;  %v538_v6 = vsel %vm428_vm5, %v1369_v56, %v1370_v55 }
 0x29b   : > { %v1921_v62 = vpop.permute.xlu1 %1252  ;;  %v1373_v63 = vpop.permute.xlu0 %1372  ;;  %v1933_v13 = vsel %vm249_vm0, %v532_v8, %v538_v6 }
 0x29c   : > { %v1375_v3 = vunpack.i.h.bf16 %v1373_v63  ;;  %v1374_v4 = vunpack.i.l.bf16 %v1373_v63  ;;  %v1255_v58 = vunpack.i.h.bf16 %v1921_v62  ;;  %v1254_v59 = vunpack.i.l.bf16 %v1921_v62 }
 0x29e   : > { %v550_v7 = vsel %vm442_vm7, %v1374_v4, %v1375_v3 }
 0x29f   : > { %v1927_v9 = vpop.permute.xlu1 %1257  ;;  %v1378_v10 = vpop.permute.xlu0 %1377  ;;  %v1930_v11 = vsel %vm249_vm0, %v544_v52, %v550_v7  ;;  %v644_v7 = vsel %vm435_vm6, %v1254_v59, %v1255_v58  ;;  %v1350_v59 = vunpack.i.h.bf16 %v1902_v30 }
 0x2a0   : > { %v1380_v14 = vunpack.i.h.bf16 %v1378_v10  ;;  %v1379_v15 = vunpack.i.l.bf16 %v1378_v10  ;;  %v1084_v16 = vpack.c.bf16 %v1930_v11, %v1933_v13  ;;  %v632_v10 = vsel %vm421_vm8, %v1249_v61, %v1250_v60 }
 0x2a1   : > { %v1355_v60 = vunpack.i.h.bf16 %v1907_v34  ;;  %v1354_v61 = vunpack.i.l.bf16 %v1907_v34 }
 0x2a2   : > { %v738_v24 = vsel %vm428_vm5, %v1379_v15, %v1380_v14 }
 0x2a3   : > { %v1939_v21 = vpop.permute.xlu1 %1262  ;;  %v1383_v22 = vpop.permute.xlu0 %1382  ;;  %v795_v29 = vsel %vm249_vm0, %v732_v27, %v738_v24 }
 0x2a4   : > { %v1385_v2 = vunpack.i.h.bf16 %v1383_v22  ;;  %v1384_v23 = vunpack.i.l.bf16 %v1383_v22 }
 0x2a6   : > { %v750_v26 = vsel %vm442_vm7, %v1384_v23, %v1385_v2 }
 0x2a7   : > { %v1945_v1 = vpop.permute.xlu1 %1267  ;;  %v1388_v28 = vpop.permute.xlu0 %1387  ;;  %v796_v5 = vsel %vm249_vm0, %v744_v25, %v750_v26 }
 0x2a8   : > { %v1390_v31 = vunpack.i.h.bf16 %v1388_v28  ;;  %v1389_v32 = vunpack.i.l.bf16 %v1388_v28  ;;  %v1102_v33 = vpack.c.bf16 %v796_v5, %v795_v29  ;;  %v1270_v26 = vunpack.i.h.bf16 %v1945_v1 }
 0x2a9   : > { %v1269_v27 = vunpack.i.l.bf16 %v1945_v1 }
 0x2aa   : > { %1103 = vmatprep.subr.bf16.mxu1 %v1102_v33  ;;  %v429_v47 = vsel %vm428_vm5, %v1389_v32, %v1390_v31 }
 0x2ab   : > { %v1273_v41 = vpop.permute.xlu1 %1272  ;;  %v1393_v44 = vpop.permute.xlu0 %1392  ;;  %v1963_v35 = vsel %vm249_vm0, %v422_v50, %v429_v47  ;;  %v756_v37 = vsel %vm449_vm12, %v1269_v27, %v1270_v26  ;;  %v1260_v47 = vunpack.i.h.bf16 %v1927_v9  ;;  %v1264_v50 = vunpack.i.l.bf16 %v1939_v21 }
 0x2ac   : > { %v1395_v45 = vunpack.i.h.bf16 %v1393_v44  ;;  %v1394_v46 = vunpack.i.l.bf16 %v1393_v44  ;;  %v1275_v24 = vunpack.i.h.bf16 %v1273_v41  ;;  %v1274_v25 = vunpack.i.l.bf16 %v1273_v41 }
 0x2ae   : > { %v443_v48 = vsel %vm442_vm7, %v1394_v46, %v1395_v45  ;;  %v768_v33 = vsel %vm463_vm10, %v1274_v25, %v1275_v24 }
 0x2af   : > { %v1957_v51 = vpop.permute.xlu1 %1277  ;;  %v1398_v43 = vpop.permute.xlu0 %1397  ;;  %v1960_v53 = vsel %vm249_vm0, %v436_v40, %v443_v48  ;;  %v1259_v40 = vunpack.i.l.bf16 %v1927_v9  ;;  %v1265_v48 = vunpack.i.h.bf16 %v1939_v21 }
 0x2b0   : > { %v1400_v55 = vunpack.i.h.bf16 %v1398_v43  ;;  %v1399_v56 = vunpack.i.l.bf16 %v1398_v43  ;;  %v1086_v57 = vpack.c.bf16 %v1960_v53, %v1963_v35 }
 0x2b1   : > { %v568_v9 = vsel %vm463_vm10, %v1264_v50, %v1265_v48 }
 0x2b2   : > { %v638_v52 = vsel %vm428_vm5, %v1399_v56, %v1400_v55 }
 0x2b3   : > { %v1971_v63 = vpop.permute.xlu1 %1282  ;;  %v1403_v3 = vpop.permute.xlu0 %1402  ;;  %v695_v49 = vsel %vm249_vm0, %v632_v10, %v638_v52  ;;  %v1279_v52 = vunpack.i.l.bf16 %v1957_v51 }
 0x2b4   : > { %v1405_v4 = vunpack.i.h.bf16 %v1403_v3  ;;  %v1404_v6 = vunpack.i.l.bf16 %v1403_v3 }
 0x2b6   : > { %v650_v8 = vsel %vm442_vm7, %v1404_v6, %v1405_v4  ;;  %v556_v4 = vsel %vm449_vm12, %v1259_v40, %v1260_v47  ;;  %v1280_v6 = vunpack.i.h.bf16 %v1957_v51 }
 0x2b7   : > { %v1977_v14 = vpop.permute.xlu1 %1287  ;;  %v1979_v62 = vpop.permute.xlu0 %1407  ;;  %v696_v15 = vsel %vm249_vm0, %v644_v7, %v650_v8 }
 0x2b8   : > { %v1104_v17 = vpack.c.bf16 %v696_v15, %v695_v49  ;;  %v1290_v7 = vunpack.i.h.bf16 %v1977_v14  ;;  %v1289_v8 = vunpack.i.l.bf16 %v1977_v14 }
 0x2ba   : > { %1105 = vmatpush1.bf16.msra.mxu1 %v1104_v17  ;;  %v1410_v17 = vunpack.i.h.bf16 %v1979_v62 }
 0x2bb   : > { %v1983_v19 = vpop.permute.xlu1 %1292  ;;  %v1985_v20 = vpop.permute.xlu0 %1412 }
 0x2bc   : > { %v1295_v14 = vunpack.i.h.bf16 %v1983_v19 }
 0x2bf   : > { %v1987_v0 = vpop.permute.xlu1 %1297  ;;  %v1418_v22 = vpop.permute.xlu0 %1417 }
 0x2c0   : > { %v1420_v2 = vunpack.i.h.bf16 %v1418_v22  ;;  %v1419_v23 = vunpack.i.l.bf16 %v1418_v22  ;;  %v1409_v22 = vunpack.i.l.bf16 %v1979_v62  ;;  %v1284_v62 = vunpack.i.l.bf16 %v1971_v63 }
 0x2c2   : > { %v762_v32 = vsel %vm456_vm9, %v1419_v23, %v1420_v2 }
 0x2c3   : > { %v1991_v28 = vpop.permute.xlu1 %1302  ;;  %v1423_v5 = vpop.permute.xlu0 %1422  ;;  %v797_v41 = vsel %vm249_vm0, %v756_v37, %v762_v32 }
 0x2c4   : > { %v1425_v29 = vunpack.i.h.bf16 %v1423_v5  ;;  %v1424_v31 = vunpack.i.l.bf16 %v1423_v5  ;;  %v1294_v5 = vunpack.i.l.bf16 %v1983_v19  ;;  %v656_v19 = vsel %vm449_vm12, %v1289_v8, %v1290_v7 }
 0x2c6   : > { %v774_v36 = vsel %vm470_vm11, %v1424_v31, %v1425_v29  ;;  %v1415_v29 = vunpack.i.h.bf16 %v1985_v20  ;;  %v1285_v31 = vunpack.i.h.bf16 %v1971_v63  ;;  %v668_v63 = vsel %vm463_vm10, %v1294_v5, %v1295_v14 }
 0x2c7   : > { %v1997_v38 = vpop.permute.xlu0 %1427  ;;  %v1308_v1 = vpop.permute.xlu1 %1307  ;;  %v798_v39 = vsel %vm249_vm0, %v768_v33, %v774_v36 }
 0x2c8   : > { %v1310_v44 = vunpack.i.h.bf16 %v1308_v1  ;;  %v1309_v45 = vunpack.i.l.bf16 %v1308_v1  ;;  %v1106_v46 = vpack.c.bf16 %v798_v39, %v797_v41  ;;  %v1430_v48 = vunpack.i.h.bf16 %v1997_v38 }
 0x2c9   : > { %v1429_v50 = vunpack.i.l.bf16 %v1997_v38 }
 0x2ca   : > { %1107 = vmatprep.subr.bf16.mxu1 %v1106_v46  ;;  %v514_v3 = vsel %vm400_vm3, %v1309_v45, %v1310_v44  ;;  %v562_v44 = vsel %vm456_vm9, %v1409_v22, %v1410_v17  ;;  %v1305_v17 = vunpack.i.h.bf16 %v1991_v28 }
 0x2cb   : > { %v1433_v43 = vpop.permute.xlu0 %1432  ;;  %v1313_v55 = vpop.permute.xlu1 %1312  ;;  %v593_v23 = vsel %vm249_vm0, %v1799_v42, %v514_v3  ;;  %v464_v3 = vsel %vm463_vm10, %v1284_v62, %v1285_v31  ;;  %v597_v38 = vsel %vm249_vm0, %v556_v4, %v562_v44 }
 0x2cc   : > { %v1315_v56 = vunpack.i.h.bf16 %v1313_v55  ;;  %v1314_v58 = vunpack.i.l.bf16 %v1313_v55  ;;  %v1435_v32 = vunpack.i.h.bf16 %v1433_v43  ;;  %v1434_v33 = vunpack.i.l.bf16 %v1433_v43 }
 0x2ce   : > { %v526_v21 = vsel %vm414_vm4, %v1314_v58, %v1315_v56 }
 0x2cf   : > { %v1438_v10 = vpop.permute.xlu0 %1437  ;;  %v1328_v15 = vpop.permute.xlu1 %1327  ;;  %v594_v49 = vsel %vm249_vm0, %v1892_v12, %v526_v21  ;;  %v1414_v12 = vunpack.i.l.bf16 %v1985_v20  ;;  %v471_v21 = vsel %vm470_vm11, %v1434_v33, %v1435_v32 }
 0x2d0   : > { %v1440_v2 = vunpack.i.h.bf16 %v1438_v10  ;;  %v1439_v24 = vunpack.i.l.bf16 %v1438_v10  ;;  %v1330_v25 = vunpack.i.h.bf16 %v1328_v15  ;;  %v1329_v26 = vunpack.i.l.bf16 %v1328_v15 }
 0x2d1   : > { %v1080_v27 = vpack.c.bf16 %v594_v49, %v593_v23  ;;  %v574_v46 = vsel %vm470_vm11, %v1414_v12, %v1415_v29  ;;  %v1300_v23 = vunpack.i.h.bf16 %v1987_v0  ;;  %v498_v4 = vsel %vm249_vm0, %v464_v3, %v471_v21 }
 0x2d2   : > { %v662_v20 = vsel %vm456_vm9, %v1439_v24, %v1440_v2  ;;  %v401_v45 = vsel %vm400_vm3, %v1329_v26, %v1330_v25  ;;  %v598_v49 = vsel %vm249_vm0, %v568_v9, %v574_v46  ;;  %v1299_v24 = vunpack.i.l.bf16 %v1987_v0 }
 0x2d3   : > { %1081 = vmatprep.subr.bf16.mxu0 %v1080_v27  ;;  %v1443_v42 = vpop.permute.xlu0 %1442  ;;  %v1333_v36 = vpop.permute.xlu1 %1332  ;;  %v493_v7 = vsel %vm249_vm0, %v1818_v54, %v401_v45  ;;  %v697_v8 = vsel %vm249_vm0, %v656_v19, %v662_v20  ;;  %v457_v54 = vsel %vm456_vm9, %v1429_v50, %v1430_v48  ;;  %v792_v0 = vsel %vm491_vm13, %v1354_v61, %v1355_v60 }
 0x2d4   : > { %v1445_v37 = vunpack.i.h.bf16 %v1443_v42  ;;  %v1444_v1 = vunpack.i.l.bf16 %v1443_v42  ;;  %v1335_v39 = vunpack.i.h.bf16 %v1333_v36  ;;  %v1334_v41 = vunpack.i.l.bf16 %v1333_v36 }
 0x2d5   : > { %v450_v29 = vsel %vm449_vm12, %v1279_v52, %v1280_v6  ;;  %v1088_v12 = vpack.c.bf16 %v598_v49, %v597_v38  ;;  %v580_v62 = vsel %vm477_vm15, %v1299_v24, %v1300_v23  ;;  %vm807_vm3 = vcmask 490496  }
 0x2d6   : > { %v674_v47 = vsel %vm470_vm11, %v1444_v1, %v1445_v37  ;;  %v415_v40 = vsel %vm414_vm4, %v1334_v41, %v1335_v39 }
 0x2d7   : > { %v1448_v43 = vpop.permute.xlu0 %1447  ;;  %v2038_v55 = vpop.permute.xlu1 %1337  ;;  %v494_v56 = vsel %vm249_vm0, %v1895_v18, %v415_v40  ;;  %v698_v58 = vsel %vm249_vm0, %v668_v63, %v674_v47  ;;  %v1304_v18 = vunpack.i.l.bf16 %v1991_v28  ;;  %v1349_v28 = vunpack.i.l.bf16 %v1902_v30  ;;  %v800_v30 = vld [vmem:[%s2163_s3] sm:$0xff] }
 0x2d8   : > { %v1082_v10 = vpack.c.bf16 %v494_v56, %v493_v7  ;;  %v1108_v15 = vpack.c.bf16 %v698_v58, %v697_v8  ;;  %v1450_v22 = vunpack.i.h.bf16 %v1448_v43  ;;  %v1449_v2 = vunpack.i.l.bf16 %v1448_v43 }
 0x2d9   : > { %v780_v31 = vsel %vm477_vm15, %v1304_v18, %v1305_v17  ;;  %v1340_v37 = vunpack.i.h.bf16 %v2038_v55  ;;  %v1339_v53 = vunpack.i.l.bf16 %v2038_v55  ;;  %v680_v47 = vsel %vm477_vm15, %v1349_v28, %v1350_v59 }
 0x2da   : > { %1083 = vmatpush1.bf16.msra.mxu0 %v1082_v10  ;;  %1109 = vmatpush1.bf16.msra.mxu1 %v1108_v15  ;;  %v586_v11 = vsel %vm484_vm14, %v1449_v2, %v1450_v22 }
 0x2db   : > { %v1453_v25 = vpop.permute.xlu0 %1452  ;;  %v1343_v26 = vpop.permute.xlu1 %1342  ;;  %1085 = vmatprep.subr.bf16.mxu0 %v1084_v16  ;;  %v497_v16 = vsel %vm249_vm0, %v450_v29, %v457_v54  ;;  %v599_v35 = vsel %vm249_vm0, %v580_v62, %v586_v11  ;;  %v478_v40 = vsel %vm477_vm15, %v1339_v53, %v1340_v37 }
 0x2dc   : > { %v1455_v27 = vunpack.i.h.bf16 %v1453_v25  ;;  %v1454_v9 = vunpack.i.l.bf16 %v1453_v25  ;;  %v1345_v14 = vunpack.i.h.bf16 %v1343_v26  ;;  %v1344_v5 = vunpack.i.l.bf16 %v1343_v26 }
 0x2dd   : > { %v1090_v61 = vpack.c.bf16 %v498_v4, %v497_v16 }
 0x2de   : > { %v786_v13 = vsel %vm484_vm14, %v1454_v9, %v1455_v27  ;;  %v592_v34 = vsel %vm491_vm13, %v1344_v5, %v1345_v14  ;;  %1087 = vmatpush1.bf16.msra.mxu0 %v1086_v57 }
 0x2df   : > { %v1458_v51 = vpop.permute.xlu0 %1457  ;;  %v1463_v60 = vpop.permute.xlu1 %1462  ;;  %v799_v6 = vsel %vm249_vm0, %v780_v31, %v786_v13  ;;  %1089 = vmatprep.subr.bf16.mxu0 %v1088_v12  ;;  %v1092_v1 = vpack.c.bf16 %v592_v34, %v599_v35 }
 0x2e0   : > { %v1460_v52 = vunpack.i.h.bf16 %v1458_v51  ;;  %v1459_v32 = vunpack.i.l.bf16 %v1458_v51  ;;  %v1465_v33 = vunpack.i.h.bf16 %v1463_v60  ;;  %v1464_v42 = vunpack.i.l.bf16 %v1463_v60 }
 0x2e1   : > { %v1110_v57 = vpack.c.bf16 %v792_v0, %v799_v6 }
 0x2e2   : > { %v485_v39 = vsel %vm484_vm14, %v1459_v32, %v1460_v52  ;;  %v686_v41 = vsel %vm484_vm14, %v1464_v42, %v1465_v33  ;;  %1091 = vmatpush1.bf16.msra.mxu0 %v1090_v61 }
 0x2e3   : > { %1112 = vmatprep.subr.msk.bf16.mxu1 %vm2081_vm2, %v1110_v57  ;;  %v1473_v19 = vpop.permute.xlu0 %1472  ;;  %v1468_v44 = vpop.permute.xlu1 %1467  ;;  %1094 = vmatprep.subr.msk.bf16.mxu0 %vm2081_vm2, %v1092_v1  ;;  %v699_v50 = vsel %vm249_vm0, %v680_v47, %v686_v41  ;;  %v499_v55 = vsel %vm249_vm0, %v478_v40, %v485_v39 }
 0x2e4   : > { %v1475_v20 = vunpack.i.h.bf16 %v1473_v19  ;;  %v1474_v45 = vunpack.i.l.bf16 %v1473_v19  ;;  %v1470_v63 = vunpack.i.h.bf16 %v1468_v44  ;;  %v1469_v46 = vunpack.i.l.bf16 %v1468_v44 }
 0x2e6   : > { %v692_v48 = vsel %vm491_vm13, %v1474_v45, %v1475_v20  ;;  %v492_v43 = vsel %vm491_vm13, %v1469_v46, %v1470_v63 }
 0x2e7   : > { %v1113_v56 = vpack.c.bf16 %v692_v48, %v699_v50  ;;  %v1095_v58 = vpack.c.bf16 %v492_v43, %v499_v55 }
 0x2e9   : > { %1097 = vmatpush1.bf16.msk.msra.mxu0 %vm2081_vm2, %v1095_v58  ;;  %1115 = vmatpush1.bf16.msk.msra.mxu1 %vm2081_vm2, %v1113_v56 }
 0x2ec   : > { %1066 = vmatmul.mubr.msk.f32.vlgmr.msra.gmra.mrb[0].mxu0 %vm807_vm3, %v800_v30  ;;  %1069 = vmatmul.mubr.msk.f32.vlgmr.msra.gmra.mrb[0].mxu1 %vm807_vm3, %v800_v30 }
 0x2f4   : > { %v805_v59 = vpop.permute.xlu1 %804 }
 0x3bf   : > { %v885_v3 = vpop.f32.mrb[0].mxu0  ;;  %v956_v21 = vpop.f32.mrb[0].mxu1 }
 0x3c0   : > { %v886_v7 = vadd.f32 %v885_v3, %v805_v59  ;;  %v957_v8 = vadd.f32 %v956_v21, %v805_v59  ;;  %v887_v10 = vpop.f32.mrb[1].mxu0  ;;  %v958_v15 = vpop.f32.mrb[1].mxu1 }
 0x3c1   : > { %v888_v38 = vadd.f32 %v887_v10, %v805_v59  ;;  %v959_v49 = vadd.f32 %v958_v15, %v805_v59 }
 0x3c2   : > { %961 = vst [vmem:[%s242_s11] sm:$0xff] %v886_v7  ;;  %1071 = vst [vmem:[%s242_s11 + $0x10] sm:$0xff] %v957_v8 }
 0x3c3   : > { %1070 = vst [vmem:[%s242_s11 + $0x8] sm:$0xff] %v888_v38  ;;  %1072 = vst [vmem:[%s242_s11 + $0x18] sm:$0xff] %v959_v49 }
 0x3c4   : > { %1535 = shalt.err (!%p1532_p2)
}
 0x3c5   : > { %s1536_s16 = scalar_lea.hbm %s2116_s28, 512  ;;  %s1540_s9 = scalar_lea.hbm %s2165_s5, 1024 }
 0x3c6   : > { %p1537_p4 = scmp.ne.s32.totalorder %s2116_s28, %s1536_s16  ;;  %p1541_p9 = scmp.lt.u32.totalorder %s2116_s28, %s2165_s5 }
 0x3c7   : > { %p1542_p1 = scmp.lt.u32.totalorder %s1540_s9, %s1536_s16  ;;  %p1544_p6 = scmp.lt.u32.totalorder %s1536_s16, %s2116_s28 }
 0x3c8   : > { %p1538_p5 = pnand %p1537_p4, %p2174_p11 }
 0x3c9   : > { %p1543_p3 = por %p1542_p1, %p1541_p9 }
 0x3ca   : > { %p1539_p7 = pneg %p1538_p5 }
 0x3cb   : > { %p1545_p12 = por %p1544_p6, %p1543_p3 }
 0x3cd   : > { %p1546_p13 = pnand %p1545_p12, %p1539_p7 }
 0x3cf   : > { %1549 = shalt.err (!%p1546_p13)
}
 0x3d0   : > { %s1612_s17 = smov 128   ;;  %s1613_s25 = smov 8  }
 0x3d1   : > { %1118 = dma.vmem_to_hbm [thread:$0]  (%p2174_p11), %s2111_s13, 512, %s2116_s28, %s969_s22, %s1612_s17, %s1612_s17, %s1613_s25  }
 0x3d2 PF: > { %s997_s26 = sand.u32 1, %s1576_s18   ;;  %p2175_p8 = scmp.ne.s32.totalorder %s2170_s6, 0 }
 0x3d3   : > { %p2176_p10 = scmp.ge.s32.totalorder %s1588_s21, 2  ;;  %s998_s29 = scalar_lea.sflag [#allocation4], %s997_s26 }
 0x3d5   : > { %p1125_p0 = pnand %p2176_p10, %p2175_p8 }
 0x3d7   : > { %1571 = dma.done.wait (!%p1125_p0), %s998_s29, 512  }
 0x3d8   : > { %1573 = vsyncadd (!%p1125_p0), %s998_s29, 4294966784  ;;  %p18_p2 = scmp.ge.s32.totalorder %s1669_s24, 4   ;;  %s2177_s18 = smov %s1580_s19 }
 0x3d9   : > { %s2178_s19 = smov %s1584_s20  ;;  %s2179_s20 = smov %s1681_s27 }
 0x3da   : > { %s2180_s21 = smov %s1669_s24  ;;  %20 = sbr.rel (!%p18_p2) target bundleno = 5 (0x5), region = 88 }
 0x3e1   :  { %1003 = vsyncpa [#allocation3], 1 }
 0x3e2   :  { %1005 = vsyncpa [#allocation3 + $0x1], 1 }
 0x3e3   :  { %1006 = vsyncpa [#allocation4], 1 }
 0x3e4   :  { %1008 = vsyncpa [#allocation4 + $0x1], 1 }

</bundles_post_ra>
